<compile_context>
chip_gen: v7x
topology: tpu7x:2x2x1
jax: 0.10.0
libtpu: 0.0.40
codegen_flags: <defaults>
</compile_context>

<pallas_src>
import jax
import jax.numpy as jnp
from jax.experimental import pallas as pl
from jax.experimental.pallas import tpu as pltpu

_LANE = 128
_VMEM_LIMIT_BYTES = 32 * 1024 * 1024     # explicit scoped-VMEM limit for pass 1
_PASS1_VMEM_BUDGET = 24 * 1024 * 1024    # budget used when sizing row tiles
_FUSED_VMEM_BUDGET = 8 * 1024 * 1024     # fused path must fit well inside the
                                         # v5e 16 MiB default scoped VMEM


def _round_up(x, m):
    return (x + m - 1) // m * m


def _nbytes(tree):
    return sum(int(x.size) * x.dtype.itemsize
               for x in jax.tree_util.tree_leaves(tree))


# ----------------------------------------------------------------------------
# Shared recurrence: T-step LSTM carry, fully unrolled, all state in registers.
# ----------------------------------------------------------------------------
def _lstm_fc_h(gx_t, w_hh, w_fch_row, T, B, H):
    """gx_t(t) -> (B, 4H) f32 gate x-part (er@w_ih + b).  Returns a (B, T) f32
    array holding sum(h_t * w_fc_h) for every t (the h-half of the final fc)."""
    h = jnp.zeros((B, H), jnp.float32)
    c = jnp.zeros((B, H), jnp.float32)
    cols = []
    for t in range(T):
        # The tiny (B,H)x(H,4H) matmul is the only truly serial work; keep it
        # f32 so the carried state is never bf16-quantised per step.
        gates = gx_t(t) + jnp.dot(h, w_hh, preferred_element_type=jnp.float32)
        # One full-width sigmoid + one full-width tanh per step (2 EUP pushes
        # instead of 4).  Gate extraction is a static lane slice: the i/f/g/o
        # lane blocks must be re-aligned before they can be combined
        # elementwise, so lane masks alone cannot replace the slices.
        sg = jax.nn.sigmoid(gates)
        tg = jnp.tanh(gates)
        i_g = sg[:, 0 * H:1 * H]
        f_g = sg[:, 1 * H:2 * H]
        g_g = tg[:, 2 * H:3 * H]
        o_g = sg[:, 3 * H:4 * H]
        c = f_g * c + i_g * g_g
        h = o_g * jnp.tanh(c)
        # fc h-half: VPU multiply + lane reduce, kept in registers (no scratch,
        # no per-step masked VMEM stores).
        cols.append(jnp.sum(h * w_fch_row, axis=-1, keepdims=True))   # (B, 1)
    return jnp.concatenate(cols, axis=1)                              # (B, T)


# ----------------------------------------------------------------------------
# Fused single-call kernel (small problems: everything VMEM resident).
# ----------------------------------------------------------------------------
def make_fused_kernel(num_lin, B, T, H):
    def kernel(*refs):
        xr_ref, xf_ref = refs[0], refs[1]
        idx = 2
        rec_w = refs[idx:idx + num_lin]; idx += num_lin
        rec_b = refs[idx:idx + num_lin]; idx += num_lin
        frm_w = refs[idx:idx + num_lin]; idx += num_lin
        frm_b = refs[idx:idx + num_lin]; idx += num_lin
        (w_ih_ref, b_lstm_ref, w_fce_ref, w_hh_ref, w_fch_ref, b_fc_ref,
         out_ref) = refs[idx:]

        er = xr_ref[...]                      # (M, D0) bf16, M = B*T, rows (b,t)
        ef = xf_ref[...]
        for l in range(num_lin):
            er = jnp.maximum(
                jnp.dot(er, rec_w[l][...], preferred_element_type=jnp.float32)
                + rec_b[l][...], 0.0).astype(jnp.bfloat16)
            ef = jnp.maximum(
                jnp.dot(ef, frm_w[l][...], preferred_element_type=jnp.float32)
                + frm_b[l][...], 0.0).astype(jnp.bfloat16)

        # LSTM input projection for every (b, t): lane/row-dense MXU matmul.
        gx = (jnp.dot(er, w_ih_ref[...], preferred_element_type=jnp.float32)
              + b_lstm_ref[...]).reshape(B, T, 4 * H)
        # fc frame-half: VPU multiply + lane reduce (no N=1 MXU matmul, never
        # leaves registers).
        d_last = ef.shape[-1]
        fce_bt = jnp.sum(ef.astype(jnp.float32).reshape(B, T, d_last)
                         * w_fce_ref[...], axis=-1)                   # (B, T)

        hsum_bt = _lstm_fc_h(lambda t: gx[:, t], w_hh_ref[...], w_fch_ref[...],
                             T, B, H)
        out_ref[...] = jax.nn.sigmoid(hsum_bt + fce_bt + b_fc_ref[...])  # (B,T)

    return kernel


# ----------------------------------------------------------------------------
# Two-pass path, pass 1: batched encoder + LSTM input projection + fc frame-half
# ----------------------------------------------------------------------------
def make_encoder_kernel(num_lin):
    def kernel(*refs):
        xr_ref, xf_ref = refs[0], refs[1]
        idx = 2
        rec_w = refs[idx:idx + num_lin]; idx += num_lin
        rec_b = refs[idx:idx + num_lin]; idx += num_lin
        frm_w = refs[idx:idx + num_lin]; idx += num_lin
        frm_b = refs[idx:idx + num_lin]; idx += num_lin
        w_ih_ref, b_lstm_ref, w_fce_ref = refs[idx], refs[idx + 1], refs[idx + 2]
        gates_ref, fceb_ref = refs[idx + 3], refs[idx + 4]

        er = xr_ref[...]                      # (TM, D0) bf16 tile of frames
        ef = xf_ref[...]
        for l in range(num_lin):
            er = jnp.maximum(
                jnp.dot(er, rec_w[l][...], preferred_element_type=jnp.float32)
                + rec_b[l][...], 0.0).astype(jnp.bfloat16)
            ef = jnp.maximum(
                jnp.dot(ef, frm_w[l][...], preferred_element_type=jnp.float32)
                + frm_b[l][...], 0.0).astype(jnp.bfloat16)

        gates_ref[...] = (jnp.dot(er, w_ih_ref[...],
                                  preferred_element_type=jnp.float32)
                          + b_lstm_ref[...])                          # (TM, 4H)
        # fc frame-half: VPU multiply + lane reduce; stored lane-dense
        # (broadcast across 128 lanes) so the writeback is an unmasked vst.
        fce = jnp.sum(ef.astype(jnp.float32) * w_fce_ref[...],
                      axis=-1, keepdims=True)                          # (TM, 1)
        fceb_ref[...] = jnp.broadcast_to(fce, fceb_ref.shape)          # (TM,128)

    return kernel


# ----------------------------------------------------------------------------
# Two-pass path, pass 2: single-invocation LSTM recurrence + fc + sigmoid
# ----------------------------------------------------------------------------
def make_recurrent_kernel(T, B, H):
    def kernel(gx_ref, fceb_ref, w_hh_ref, w_fch_ref, b_fc_ref, out_ref):
        # gx_ref is the (B, T, 4H) f32 slab (pure reshape view, no host
        # transpose); the per-step time index is a cheap in-VMEM sublane pick.
        fce_bt = fceb_ref[...][:, :, 0]                                # (B, T)
        hsum_bt = _lstm_fc_h(lambda t: gx_ref[:, t], w_hh_ref[...],
                             w_fch_ref[...], T, B, H)
        out_ref[...] = jax.nn.sigmoid(hsum_bt + fce_bt + b_fc_ref[...])  # (B,T)

    return kernel


# ----------------------------------------------------------------------------
# Wrappers
# ----------------------------------------------------------------------------
def _choose_tm(M, D0, H4, weight_bytes):
    # Target 256 rows per tile (fills the 256-wide MXU M dim on v6e/v7x and
    # amortises the ~0.35 us per-grid-step overhead) but keep the grid length
    # >= 2 so a v7x megacore can shard the "parallel" axis across both TCs.
    if M >= 512:
        tm = 256
    else:
        tm = max(8, _round_up(-(-M // 2), 8))
    while tm > 8:
        tile_bytes = (2 * 2 * tm * D0 * 2      # xr/xf bf16 tiles, double-buffered
                      + 2 * tm * H4 * 4        # gates output, double-buffered
                      + 2 * tm * _LANE * 4)    # fce output, double-buffered
        if weight_bytes + tile_bytes <= _PASS1_VMEM_BUDGET:
            break
        tm = max(8, _round_up(tm // 2, 8))
    # TODO(synk): if pass 1 is still VMEM-tight at very large D0 (v7x: 64 MiB
    # physical VMEM), add a K grid axis ("arbitrary") over the first encoder
    # layer with an f32 accumulator instead of shrinking tm further.
    return tm


def _resident_spec(arr):
    nd = arr.ndim
    # Constant-index resident operand (weight/bias): block == full array and a
    # single pipeline buffer — no pointless double buffering of weights.
    return pl.BlockSpec(arr.shape, lambda i: (0,) * nd,
                        pipeline_mode=pl.Buffered(1))


def _forward_fused(xr, xf, p, B, T, H, sizes):
    num_lin = len(sizes) - 1
    args = [xr, xf, *p["rec_w"], *p["rec_b"], *p["frm_w"], *p["frm_b"],
            p["w_ih"], p["b_lstm"], p["w_fce_row"], p["w_hh"], p["w_fch_row"],
            p["b_fc"]]
    return pl.pallas_call(
        make_fused_kernel(num_lin, B, T, H),
        out_shape=jax.ShapeDtypeStruct((B, T), jnp.float32),
    )(*args)


def _forward_two_pass(xr, xf, p, B, T, H, sizes):
    num_lin = len(sizes) - 1
    M = B * T
    D0 = sizes[0]
    H4 = 4 * H
    weight_bytes = _nbytes([p["rec_w"], p["rec_b"], p["frm_w"], p["frm_b"],
                            p["w_ih"], p["b_lstm"], p["w_fce_row"]])
    TM = _choose_tm(M, D0, H4, weight_bytes)

    in_specs = [pl.BlockSpec((TM, D0), lambda i: (i, 0)),
                pl.BlockSpec((TM, D0), lambda i: (i, 0))]
    args = [xr, xf]
    for group in (p["rec_w"], p["rec_b"], p["frm_w"], p["frm_b"]):
        for arr in group:
            args.append(arr)
            in_specs.append(_resident_spec(arr))
    for arr in (p["w_ih"], p["b_lstm"], p["w_fce_row"]):
        args.append(arr)
        in_specs.append(_resident_spec(arr))

    # No host-side padding of the frame tensors: the grid uses pl.cdiv and the
    # ragged tail block is clipped on writeback (pass 1 is row-independent).
    gates_x, fceb = pl.pallas_call(
        make_encoder_kernel(num_lin),
        out_shape=(jax.ShapeDtypeStruct((M, H4), jnp.float32),
                   jax.ShapeDtypeStruct((M, _LANE), jnp.float32)),
        grid=(pl.cdiv(M, TM),),
        in_specs=in_specs,
        out_specs=(pl.BlockSpec((TM, H4), lambda i: (i, 0)),
                   pl.BlockSpec((TM, _LANE), lambda i: (i, 0))),
        compiler_params=pltpu.CompilerParams(
            dimension_semantics=("parallel",),
            vmem_limit_bytes=_VMEM_LIMIT_BYTES),
    )(*args)

    # Pure reshape views — no host-side transpose of the inter-pass tensors.
    gx_btk = gates_x.reshape(B, T, H4)
    fceb_btl = fceb.reshape(B, T, _LANE)

    # TODO(synk): for very long sequences, tile pass 2 over T with a carried
    # (h, c) state instead of holding the whole (B, T, 4H) slab in VMEM.
    return pl.pallas_call(
        make_recurrent_kernel(T, B, H),
        out_shape=jax.ShapeDtypeStruct((B, T), jnp.float32),
    )(gx_btk, fceb_btl, p["w_hh"], p["w_fch_row"], p["b_fc"])


def cndtn_dcgan_lstm_forward(input_frames, next_frames, params, disc_hid_size,
                             enc_stack_sizes, force_two_pass=False):
    """Forward pass.  `params` must come from prepare_params()."""
    assert input_frames.shape[0] == next_frames.shape[0]
    B, T = input_frames.shape[:2]
    sizes = tuple(enc_stack_sizes)
    H = disc_hid_size
    assert sizes[-1] == H, \
        "the module's fc(2*disc_hid_size, 1) requires enc_stack_sizes[-1] == disc_hid_size"
    M = B * T

    # Flatten frames (pure view, row index = b*T + t) and cast to bf16 — this
    # halves the dominant HBM read of the encoder matmuls.
    xr = input_frames.reshape(M, -1).astype(jnp.bfloat16)
    xf = next_frames.reshape(M, -1).astype(jnp.bfloat16)
    assert xr.shape[-1] == sizes[0]

    weight_bytes = _nbytes(params)
    fused_bytes = (2 * M * sizes[0] * 2 + weight_bytes
                   + 8 * M * max(max(sizes), 4 * H + _LANE) * 4)
    if fused_bytes <= _FUSED_VMEM_BUDGET and not force_two_pass:
        out_bt = _forward_fused(xr, xf, params, B, T, H, sizes)
    else:
        out_bt = _forward_two_pass(xr, xf, params, B, T, H, sizes)
    # Return (T, B) like the PyTorch module; transposing 16 floats is free.
    return out_bt.T


# ----------------------------------------------------------------------------
# One-time parameter preparation (hoisted out of the forward pass)
# ----------------------------------------------------------------------------
def prepare_params(params):
    """One-time dtype casts / layout prep of all weights.

    Expected layouts (real PyTorch LSTMCell checkpoints store weight_ih/hh as
    (4H, in) with separate bias_ih / bias_hh — transpose the weights and sum
    the biases when importing real checkpoints):
      w_ih: (enc_stack_sizes[-1], 4H)   w_hh: (H, 4H)   gate order i, f, g, o
      b_lstm: (1, 4H) = bias_ih + bias_hh
      w_fc_h: (H, 1)   w_fc_e: (enc_stack_sizes[-1], 1)   b_fc: (1, 1)
    """
    return {
        "rec_w": [w.astype(jnp.bfloat16) for w in params["rec_w"]],
        "rec_b": [b.astype(jnp.float32) for b in params["rec_b"]],
        "frm_w": [w.astype(jnp.bfloat16) for w in params["frm_w"]],
        "frm_b": [b.astype(jnp.float32) for b in params["frm_b"]],
        "w_ih": params["w_ih"].astype(jnp.bfloat16),
        "b_lstm": params["b_lstm"].astype(jnp.float32),
        "w_hh": params["w_hh"].astype(jnp.float32),            # tiny matmul: f32
        "w_fce_row": params["w_fc_e"].T.astype(jnp.float32),   # (1, D_last)
        "w_fch_row": params["w_fc_h"].T.astype(jnp.float32),   # (1, H)
        "b_fc": params["b_fc"].astype(jnp.float32),            # (1, 1)
    }


# ----------------------------------------------------------------------------
# Deterministic synthetic parameter init (matches the module's __init__ shapes)
# ----------------------------------------------------------------------------
def init_params(key, disc_hid_size, enc_stack_sizes):
    num_lin = len(enc_stack_sizes) - 1
    H = disc_hid_size
    d_last = enc_stack_sizes[-1]
    scale = 0.05
    keys = jax.random.split(key, 4 * num_lin + 8)
    k = iter(keys)

    def lin(kw, kb, fan_in, fan_out):
        w = scale * jax.random.normal(kw, (fan_in, fan_out), jnp.float32)
        b = scale * jax.random.normal(kb, (1, fan_out), jnp.float32)
        return w, b

    params = {"rec_w": [], "rec_b": [], "frm_w": [], "frm_b": []}
    for l in range(num_lin):
        w, b = lin(next(k), next(k), enc_stack_sizes[l], enc_stack_sizes[l + 1])
        params["rec_w"].append(w)
        params["rec_b"].append(b)
    for l in range(num_lin):
        w, b = lin(next(k), next(k), enc_stack_sizes[l], enc_stack_sizes[l + 1])
        params["frm_w"].append(w)
        params["frm_b"].append(b)

    params["w_ih"] = scale * jax.random.normal(next(k), (d_last, 4 * H), jnp.float32)
    params["w_hh"] = scale * jax.random.normal(next(k), (H, 4 * H), jnp.float32)
    params["b_lstm"] = scale * jax.random.normal(next(k), (1, 4 * H), jnp.float32)
    params["w_fc_h"] = scale * jax.random.normal(next(k), (H, 1), jnp.float32)
    params["w_fc_e"] = scale * jax.random.normal(next(k), (d_last, 1), jnp.float32)
    params["b_fc"] = scale * jax.random.normal(next(k), (1, 1), jnp.float32)
    return params


# ----------------------------------------------------------------------------
# Pure-JAX reference (mirrors the PyTorch forward exactly, f32)
# ----------------------------------------------------------------------------
def reference_forward(input_frames, next_frames, params, H, enc_stack_sizes):
    B, T = input_frames.shape[:2]
    num_lin = len(enc_stack_sizes) - 1
    xr = input_frames.reshape(B, T, -1).astype(jnp.float32)
    xf = next_frames.reshape(B, T, -1).astype(jnp.float32)
    h = jnp.zeros((B, H), jnp.float32)
    c = jnp.zeros((B, H), jnp.float32)
    outs = []
    for t in range(T):
        er = xr[:, t]
        ef = xf[:, t]
        for l in range(num_lin):
            er = jax.nn.relu(er @ params["rec_w"][l] + params["rec_b"][l])
            ef = jax.nn.relu(ef @ params["frm_w"][l] + params["frm_b"][l])
        gates = er @ params["w_ih"] + h @ params["w_hh"] + params["b_lstm"]
        i_g = jax.nn.sigmoid(gates[:, :H])
        f_g = jax.nn.sigmoid(gates[:, H:2 * H])
        g_g = jnp.tanh(gates[:, 2 * H:3 * H])
        o_g = jax.nn.sigmoid(gates[:, 3 * H:])
        c = f_g * c + i_g * g_g
        h = o_g * jnp.tanh(c)
        logit = h @ params["w_fc_h"] + ef @ params["w_fc_e"] + params["b_fc"]
        outs.append(jax.nn.sigmoid(logit)[:, 0])
    return jnp.stack(outs)  # (T, B)


# ----------------------------------------------------------------------------
# Main
# ----------------------------------------------------------------------------
if __name__ == "__main__":
    B, T, C, S = 2, 8, 4, 16
    disc_hid_size = 32
    enc_stack_sizes = (C * S * S, 128, 32)   # last == disc_hid_size, as the
                                             # module's fc(2*disc_hid_size, 1) requires

    key = jax.random.PRNGKey(0)
    k_in, k_nx, k_par = jax.random.split(key, 3)
    input_frames = jax.random.normal(k_in, (B, T, C, S, S), jnp.float32)
    next_frames = jax.random.normal(k_nx, (B, T, C, S, S), jnp.float32)

    params = init_params(k_par, disc_hid_size, enc_stack_sizes)
    prepped = prepare_params(params)          # hoisted one-time casts/transposes

    fwd = jax.jit(cndtn_dcgan_lstm_forward,
                  static_argnames=("disc_hid_size", "enc_stack_sizes",
                                   "force_two_pass"))

    # Default dispatch -> fused single-call kernel (benchmark-sized problem).
    out_fused = jax.block_until_ready(
        fwd(input_frames, next_frames, prepped,
            disc_hid_size=disc_hid_size, enc_stack_sizes=enc_stack_sizes))
    # Also exercise the two-pass path used for realistic PredNet sizes.
    out_two = jax.block_until_ready(
        fwd(input_frames, next_frames, prepped,
            disc_hid_size=disc_hid_size, enc_stack_sizes=enc_stack_sizes,
            force_two_pass=True))

    ref = reference_forward(input_frames, next_frames, params,
                            disc_hid_size, enc_stack_sizes)
    assert out_fused.shape == (T, B), out_fused.shape
    assert out_two.shape == (T, B), out_two.shape
    # bf16 MXU encoder vs f32 reference -> slightly loosened tolerance
    assert jnp.allclose(out_fused, ref, atol=5e-3, rtol=5e-3), \
        f"fused: max abs err {float(jnp.max(jnp.abs(out_fused - ref)))}"
    assert jnp.allclose(out_two, ref, atol=5e-3, rtol=5e-3), \
        f"two-pass: max abs err {float(jnp.max(jnp.abs(out_two - ref)))}"
    print("KERNEL_OK")
</pallas_src>

<mosaic_0001>
module attributes {stable_mosaic.version = 11 : i64} {
  func.func @kernel(%arg0: memref<16x1024xbf16, #tpu.memory_space<vmem>>, %arg1: memref<16x1024xbf16, #tpu.memory_space<vmem>>, %arg2: memref<1024x128xbf16, #tpu.memory_space<vmem>>, %arg3: memref<128x32xbf16, #tpu.memory_space<vmem>>, %arg4: memref<1x128xf32, #tpu.memory_space<vmem>>, %arg5: memref<1x32xf32, #tpu.memory_space<vmem>>, %arg6: memref<1024x128xbf16, #tpu.memory_space<vmem>>, %arg7: memref<128x32xbf16, #tpu.memory_space<vmem>>, %arg8: memref<1x128xf32, #tpu.memory_space<vmem>>, %arg9: memref<1x32xf32, #tpu.memory_space<vmem>>, %arg10: memref<32x128xbf16, #tpu.memory_space<vmem>>, %arg11: memref<1x128xf32, #tpu.memory_space<vmem>>, %arg12: memref<1x32xf32, #tpu.memory_space<vmem>>, %arg13: memref<32x128xf32, #tpu.memory_space<vmem>>, %arg14: memref<1x32xf32, #tpu.memory_space<vmem>>, %arg15: memref<1x1xf32, #tpu.memory_space<vmem>>, %arg16: memref<2x8xf32, #tpu.memory_space<vmem>>) attributes {dimension_semantics = [], scalar_prefetch = 0 : i64, scratch_operands = 0 : i64, tpu.core_type = #tpu.core_type<tc>} {
    %c0 = arith.constant 0 : index
    %c0_0 = arith.constant 0 : index
    %0 = vector.load %arg0[%c0, %c0_0] : memref<16x1024xbf16, #tpu.memory_space<vmem>>, vector<16x1024xbf16>
    %c0_1 = arith.constant 0 : index
    %c0_2 = arith.constant 0 : index
    %1 = vector.load %arg1[%c0_1, %c0_2] : memref<16x1024xbf16, #tpu.memory_space<vmem>>, vector<16x1024xbf16>
    %c0_3 = arith.constant 0 : index
    %c0_4 = arith.constant 0 : index
    %2 = vector.load %arg2[%c0_3, %c0_4] : memref<1024x128xbf16, #tpu.memory_space<vmem>>, vector<1024x128xbf16>
    %cst = arith.constant dense<0.000000e+00> : vector<16x128xf32>
    %3 = tpu.matmul %0, %2, %cst {dimension_numbers = #tpu.dot_dimension_numbers<[1], [0], [0], [1], [0, 0, 1, 1], [], []>} : vector<16x1024xbf16>, vector<1024x128xbf16>, vector<16x128xf32> -> vector<16x128xf32>
    %c0_5 = arith.constant 0 : index
    %c0_6 = arith.constant 0 : index
    %4 = vector.load %arg4[%c0_5, %c0_6] : memref<1x128xf32, #tpu.memory_space<vmem>>, vector<1x128xf32>
    %5 = vector.broadcast %4 : vector<1x128xf32> to vector<16x128xf32>
    %6 = arith.addf %3, %5 : vector<16x128xf32>
    %cst_7 = arith.constant 0.000000e+00 : f32
    %7 = vector.broadcast %cst_7 : f32 to vector<16x128xf32>
    %8 = arith.maximumf %6, %7 : vector<16x128xf32>
    %9 = arith.truncf %8 : vector<16x128xf32> to vector<16x128xbf16>
    %c0_8 = arith.constant 0 : index
    %c0_9 = arith.constant 0 : index
    %10 = vector.load %arg6[%c0_8, %c0_9] : memref<1024x128xbf16, #tpu.memory_space<vmem>>, vector<1024x128xbf16>
    %cst_10 = arith.constant dense<0.000000e+00> : vector<16x128xf32>
    %11 = tpu.matmul %1, %10, %cst_10 {dimension_numbers = #tpu.dot_dimension_numbers<[1], [0], [0], [1], [0, 0, 1, 1], [], []>} : vector<16x1024xbf16>, vector<1024x128xbf16>, vector<16x128xf32> -> vector<16x128xf32>
    %c0_11 = arith.constant 0 : index
    %c0_12 = arith.constant 0 : index
    %12 = vector.load %arg8[%c0_11, %c0_12] : memref<1x128xf32, #tpu.memory_space<vmem>>, vector<1x128xf32>
    %13 = vector.broadcast %12 : vector<1x128xf32> to vector<16x128xf32>
    %14 = arith.addf %11, %13 : vector<16x128xf32>
    %cst_13 = arith.constant 0.000000e+00 : f32
    %15 = vector.broadcast %cst_13 : f32 to vector<16x128xf32>
    %16 = arith.maximumf %14, %15 : vector<16x128xf32>
    %17 = arith.truncf %16 : vector<16x128xf32> to vector<16x128xbf16>
    %c0_14 = arith.constant 0 : index
    %c0_15 = arith.constant 0 : index
    %18 = vector.load %arg3[%c0_14, %c0_15] : memref<128x32xbf16, #tpu.memory_space<vmem>>, vector<128x32xbf16>
    %cst_16 = arith.constant dense<0.000000e+00> : vector<16x32xf32>
    %19 = tpu.matmul %9, %18, %cst_16 {dimension_numbers = #tpu.dot_dimension_numbers<[1], [0], [0], [1], [0, 0, 1, 1], [], []>} : vector<16x128xbf16>, vector<128x32xbf16>, vector<16x32xf32> -> vector<16x32xf32>
    %c0_17 = arith.constant 0 : index
    %c0_18 = arith.constant 0 : index
    %20 = vector.load %arg5[%c0_17, %c0_18] : memref<1x32xf32, #tpu.memory_space<vmem>>, vector<1x32xf32>
    %21 = vector.broadcast %20 : vector<1x32xf32> to vector<16x32xf32>
    %22 = arith.addf %19, %21 : vector<16x32xf32>
    %cst_19 = arith.constant 0.000000e+00 : f32
    %23 = vector.broadcast %cst_19 : f32 to vector<16x32xf32>
    %24 = arith.maximumf %22, %23 : vector<16x32xf32>
    %25 = arith.truncf %24 : vector<16x32xf32> to vector<16x32xbf16>
    %c0_20 = arith.constant 0 : index
    %c0_21 = arith.constant 0 : index
    %26 = vector.load %arg7[%c0_20, %c0_21] : memref<128x32xbf16, #tpu.memory_space<vmem>>, vector<128x32xbf16>
    %cst_22 = arith.constant dense<0.000000e+00> : vector<16x32xf32>
    %27 = tpu.matmul %17, %26, %cst_22 {dimension_numbers = #tpu.dot_dimension_numbers<[1], [0], [0], [1], [0, 0, 1, 1], [], []>} : vector<16x128xbf16>, vector<128x32xbf16>, vector<16x32xf32> -> vector<16x32xf32>
    %c0_23 = arith.constant 0 : index
    %c0_24 = arith.constant 0 : index
    %28 = vector.load %arg9[%c0_23, %c0_24] : memref<1x32xf32, #tpu.memory_space<vmem>>, vector<1x32xf32>
    %29 = vector.broadcast %28 : vector<1x32xf32> to vector<16x32xf32>
    %30 = arith.addf %27, %29 : vector<16x32xf32>
    %cst_25 = arith.constant 0.000000e+00 : f32
    %31 = vector.broadcast %cst_25 : f32 to vector<16x32xf32>
    %32 = arith.maximumf %30, %31 : vector<16x32xf32>
    %33 = arith.truncf %32 : vector<16x32xf32> to vector<16x32xbf16>
    %c0_26 = arith.constant 0 : index
    %c0_27 = arith.constant 0 : index
    %34 = vector.load %arg10[%c0_26, %c0_27] : memref<32x128xbf16, #tpu.memory_space<vmem>>, vector<32x128xbf16>
    %cst_28 = arith.constant dense<0.000000e+00> : vector<16x128xf32>
    %35 = tpu.matmul %25, %34, %cst_28 {dimension_numbers = #tpu.dot_dimension_numbers<[1], [0], [0], [1], [0, 0, 1, 1], [], []>} : vector<16x32xbf16>, vector<32x128xbf16>, vector<16x128xf32> -> vector<16x128xf32>
    %c0_29 = arith.constant 0 : index
    %c0_30 = arith.constant 0 : index
    %36 = vector.load %arg11[%c0_29, %c0_30] : memref<1x128xf32, #tpu.memory_space<vmem>>, vector<1x128xf32>
    %37 = vector.broadcast %36 : vector<1x128xf32> to vector<16x128xf32>
    %38 = arith.addf %35, %37 : vector<16x128xf32>
    %39 = vector.shape_cast %38 : vector<16x128xf32> to vector<2x8x128xf32>
    %40 = arith.extf %33 : vector<16x32xbf16> to vector<16x32xf32>
    %41 = vector.shape_cast %40 : vector<16x32xf32> to vector<2x8x32xf32>
    %c0_31 = arith.constant 0 : index
    %c0_32 = arith.constant 0 : index
    %42 = vector.load %arg12[%c0_31, %c0_32] : memref<1x32xf32, #tpu.memory_space<vmem>>, vector<1x32xf32>
    %43 = vector.shape_cast %42 : vector<1x32xf32> to vector<1x1x32xf32>
    %44 = vector.broadcast %43 : vector<1x1x32xf32> to vector<2x8x32xf32>
    %45 = arith.mulf %41, %44 : vector<2x8x32xf32>
    %cst_33 = arith.constant dense<0.000000e+00> : vector<2x8xf32>
    %46 = vector.multi_reduction <add>, %45, %cst_33 [2] : vector<2x8x32xf32> to vector<2x8xf32>
    %c0_34 = arith.constant 0 : index
    %c0_35 = arith.constant 0 : index
    %47 = vector.load %arg13[%c0_34, %c0_35] : memref<32x128xf32, #tpu.memory_space<vmem>>, vector<32x128xf32>
    %c0_36 = arith.constant 0 : index
    %c0_37 = arith.constant 0 : index
    %48 = vector.load %arg14[%c0_36, %c0_37] : memref<1x32xf32, #tpu.memory_space<vmem>>, vector<1x32xf32>
    %cst_38 = arith.constant 0.000000e+00 : f32
    %49 = vector.broadcast %cst_38 : f32 to vector<2x32xf32>
    %cst_39 = arith.constant 0.000000e+00 : f32
    %50 = vector.broadcast %cst_39 : f32 to vector<2x32xf32>
    %51 = vector.extract_strided_slice %39 {offsets = [0, 0, 0], sizes = [2, 1, 128], strides = [1, 1, 1]} : vector<2x8x128xf32> to vector<2x1x128xf32>
    %52 = vector.shape_cast %51 : vector<2x1x128xf32> to vector<2x128xf32>
    %cst_40 = arith.constant dense<0.000000e+00> : vector<2x128xf32>
    %53 = tpu.matmul %49, %47, %cst_40 {dimension_numbers = #tpu.dot_dimension_numbers<[1], [0], [0], [1], [0, 0, 1, 1], [], []>} : vector<2x32xf32>, vector<32x128xf32>, vector<2x128xf32> -> vector<2x128xf32>
    %54 = arith.addf %52, %53 : vector<2x128xf32>
    %55 = arith.negf %54 : vector<2x128xf32>
    %56 = math.exp %55 : vector<2x128xf32>
    %cst_41 = arith.constant 1.000000e+00 : f32
    %57 = vector.broadcast %cst_41 : f32 to vector<2x128xf32>
    %58 = arith.addf %57, %56 : vector<2x128xf32>
    %59 = arith.divf %57, %58 : vector<2x128xf32>
    %60 = math.tanh %54 : vector<2x128xf32>
    %61 = vector.extract_strided_slice %59 {offsets = [0, 0], sizes = [2, 32], strides = [1, 1]} : vector<2x128xf32> to vector<2x32xf32>
    %62 = vector.extract_strided_slice %59 {offsets = [0, 32], sizes = [2, 32], strides = [1, 1]} : vector<2x128xf32> to vector<2x32xf32>
    %63 = vector.extract_strided_slice %60 {offsets = [0, 64], sizes = [2, 32], strides = [1, 1]} : vector<2x128xf32> to vector<2x32xf32>
    %64 = vector.extract_strided_slice %59 {offsets = [0, 96], sizes = [2, 32], strides = [1, 1]} : vector<2x128xf32> to vector<2x32xf32>
    %65 = arith.mulf %62, %50 : vector<2x32xf32>
    %66 = arith.mulf %61, %63 : vector<2x32xf32>
    %67 = arith.addf %65, %66 : vector<2x32xf32>
    %68 = math.tanh %67 : vector<2x32xf32>
    %69 = arith.mulf %64, %68 : vector<2x32xf32>
    %70 = vector.broadcast %48 : vector<1x32xf32> to vector<2x32xf32>
    %71 = arith.mulf %69, %70 : vector<2x32xf32>
    %cst_42 = arith.constant dense<0.000000e+00> : vector<2xf32>
    %72 = vector.multi_reduction <add>, %71, %cst_42 [1] : vector<2x32xf32> to vector<2xf32>
    %73 = vector.shape_cast %72 : vector<2xf32> to vector<2x1xf32>
    %74 = vector.extract_strided_slice %39 {offsets = [0, 1, 0], sizes = [2, 1, 128], strides = [1, 1, 1]} : vector<2x8x128xf32> to vector<2x1x128xf32>
    %75 = vector.shape_cast %74 : vector<2x1x128xf32> to vector<2x128xf32>
    %cst_43 = arith.constant dense<0.000000e+00> : vector<2x128xf32>
    %76 = tpu.matmul %69, %47, %cst_43 {dimension_numbers = #tpu.dot_dimension_numbers<[1], [0], [0], [1], [0, 0, 1, 1], [], []>} : vector<2x32xf32>, vector<32x128xf32>, vector<2x128xf32> -> vector<2x128xf32>
    %77 = arith.addf %75, %76 : vector<2x128xf32>
    %78 = arith.negf %77 : vector<2x128xf32>
    %79 = math.exp %78 : vector<2x128xf32>
    %cst_44 = arith.constant 1.000000e+00 : f32
    %80 = vector.broadcast %cst_44 : f32 to vector<2x128xf32>
    %81 = arith.addf %80, %79 : vector<2x128xf32>
    %82 = arith.divf %80, %81 : vector<2x128xf32>
    %83 = math.tanh %77 : vector<2x128xf32>
    %84 = vector.extract_strided_slice %82 {offsets = [0, 0], sizes = [2, 32], strides = [1, 1]} : vector<2x128xf32> to vector<2x32xf32>
    %85 = vector.extract_strided_slice %82 {offsets = [0, 32], sizes = [2, 32], strides = [1, 1]} : vector<2x128xf32> to vector<2x32xf32>
    %86 = vector.extract_strided_slice %83 {offsets = [0, 64], sizes = [2, 32], strides = [1, 1]} : vector<2x128xf32> to vector<2x32xf32>
    %87 = vector.extract_strided_slice %82 {offsets = [0, 96], sizes = [2, 32], strides = [1, 1]} : vector<2x128xf32> to vector<2x32xf32>
    %88 = arith.mulf %85, %67 : vector<2x32xf32>
    %89 = arith.mulf %84, %86 : vector<2x32xf32>
    %90 = arith.addf %88, %89 : vector<2x32xf32>
    %91 = math.tanh %90 : vector<2x32xf32>
    %92 = arith.mulf %87, %91 : vector<2x32xf32>
    %93 = vector.broadcast %48 : vector<1x32xf32> to vector<2x32xf32>
    %94 = arith.mulf %92, %93 : vector<2x32xf32>
    %cst_45 = arith.constant dense<0.000000e+00> : vector<2xf32>
    %95 = vector.multi_reduction <add>, %94, %cst_45 [1] : vector<2x32xf32> to vector<2xf32>
    %96 = vector.shape_cast %95 : vector<2xf32> to vector<2x1xf32>
    %97 = vector.extract_strided_slice %39 {offsets = [0, 2, 0], sizes = [2, 1, 128], strides = [1, 1, 1]} : vector<2x8x128xf32> to vector<2x1x128xf32>
    %98 = vector.shape_cast %97 : vector<2x1x128xf32> to vector<2x128xf32>
    %cst_46 = arith.constant dense<0.000000e+00> : vector<2x128xf32>
    %99 = tpu.matmul %92, %47, %cst_46 {dimension_numbers = #tpu.dot_dimension_numbers<[1], [0], [0], [1], [0, 0, 1, 1], [], []>} : vector<2x32xf32>, vector<32x128xf32>, vector<2x128xf32> -> vector<2x128xf32>
    %100 = arith.addf %98, %99 : vector<2x128xf32>
    %101 = arith.negf %100 : vector<2x128xf32>
    %102 = math.exp %101 : vector<2x128xf32>
    %cst_47 = arith.constant 1.000000e+00 : f32
    %103 = vector.broadcast %cst_47 : f32 to vector<2x128xf32>
    %104 = arith.addf %103, %102 : vector<2x128xf32>
    %105 = arith.divf %103, %104 : vector<2x128xf32>
    %106 = math.tanh %100 : vector<2x128xf32>
    %107 = vector.extract_strided_slice %105 {offsets = [0, 0], sizes = [2, 32], strides = [1, 1]} : vector<2x128xf32> to vector<2x32xf32>
    %108 = vector.extract_strided_slice %105 {offsets = [0, 32], sizes = [2, 32], strides = [1, 1]} : vector<2x128xf32> to vector<2x32xf32>
    %109 = vector.extract_strided_slice %106 {offsets = [0, 64], sizes = [2, 32], strides = [1, 1]} : vector<2x128xf32> to vector<2x32xf32>
    %110 = vector.extract_strided_slice %105 {offsets = [0, 96], sizes = [2, 32], strides = [1, 1]} : vector<2x128xf32> to vector<2x32xf32>
    %111 = arith.mulf %108, %90 : vector<2x32xf32>
    %112 = arith.mulf %107, %109 : vector<2x32xf32>
    %113 = arith.addf %111, %112 : vector<2x32xf32>
    %114 = math.tanh %113 : vector<2x32xf32>
    %115 = arith.mulf %110, %114 : vector<2x32xf32>
    %116 = vector.broadcast %48 : vector<1x32xf32> to vector<2x32xf32>
    %117 = arith.mulf %115, %116 : vector<2x32xf32>
    %cst_48 = arith.constant dense<0.000000e+00> : vector<2xf32>
    %118 = vector.multi_reduction <add>, %117, %cst_48 [1] : vector<2x32xf32> to vector<2xf32>
    %119 = vector.shape_cast %118 : vector<2xf32> to vector<2x1xf32>
    %120 = vector.extract_strided_slice %39 {offsets = [0, 3, 0], sizes = [2, 1, 128], strides = [1, 1, 1]} : vector<2x8x128xf32> to vector<2x1x128xf32>
    %121 = vector.shape_cast %120 : vector<2x1x128xf32> to vector<2x128xf32>
    %cst_49 = arith.constant dense<0.000000e+00> : vector<2x128xf32>
    %122 = tpu.matmul %115, %47, %cst_49 {dimension_numbers = #tpu.dot_dimension_numbers<[1], [0], [0], [1], [0, 0, 1, 1], [], []>} : vector<2x32xf32>, vector<32x128xf32>, vector<2x128xf32> -> vector<2x128xf32>
    %123 = arith.addf %121, %122 : vector<2x128xf32>
    %124 = arith.negf %123 : vector<2x128xf32>
    %125 = math.exp %124 : vector<2x128xf32>
    %cst_50 = arith.constant 1.000000e+00 : f32
    %126 = vector.broadcast %cst_50 : f32 to vector<2x128xf32>
    %127 = arith.addf %126, %125 : vector<2x128xf32>
    %128 = arith.divf %126, %127 : vector<2x128xf32>
    %129 = math.tanh %123 : vector<2x128xf32>
    %130 = vector.extract_strided_slice %128 {offsets = [0, 0], sizes = [2, 32], strides = [1, 1]} : vector<2x128xf32> to vector<2x32xf32>
    %131 = vector.extract_strided_slice %128 {offsets = [0, 32], sizes = [2, 32], strides = [1, 1]} : vector<2x128xf32> to vector<2x32xf32>
    %132 = vector.extract_strided_slice %129 {offsets = [0, 64], sizes = [2, 32], strides = [1, 1]} : vector<2x128xf32> to vector<2x32xf32>
    %133 = vector.extract_strided_slice %128 {offsets = [0, 96], sizes = [2, 32], strides = [1, 1]} : vector<2x128xf32> to vector<2x32xf32>
    %134 = arith.mulf %131, %113 : vector<2x32xf32>
    %135 = arith.mulf %130, %132 : vector<2x32xf32>
    %136 = arith.addf %134, %135 : vector<2x32xf32>
    %137 = math.tanh %136 : vector<2x32xf32>
    %138 = arith.mulf %133, %137 : vector<2x32xf32>
    %139 = vector.broadcast %48 : vector<1x32xf32> to vector<2x32xf32>
    %140 = arith.mulf %138, %139 : vector<2x32xf32>
    %cst_51 = arith.constant dense<0.000000e+00> : vector<2xf32>
    %141 = vector.multi_reduction <add>, %140, %cst_51 [1] : vector<2x32xf32> to vector<2xf32>
    %142 = vector.shape_cast %141 : vector<2xf32> to vector<2x1xf32>
    %143 = vector.extract_strided_slice %39 {offsets = [0, 4, 0], sizes = [2, 1, 128], strides = [1, 1, 1]} : vector<2x8x128xf32> to vector<2x1x128xf32>
    %144 = vector.shape_cast %143 : vector<2x1x128xf32> to vector<2x128xf32>
    %cst_52 = arith.constant dense<0.000000e+00> : vector<2x128xf32>
    %145 = tpu.matmul %138, %47, %cst_52 {dimension_numbers = #tpu.dot_dimension_numbers<[1], [0], [0], [1], [0, 0, 1, 1], [], []>} : vector<2x32xf32>, vector<32x128xf32>, vector<2x128xf32> -> vector<2x128xf32>
    %146 = arith.addf %144, %145 : vector<2x128xf32>
    %147 = arith.negf %146 : vector<2x128xf32>
    %148 = math.exp %147 : vector<2x128xf32>
    %cst_53 = arith.constant 1.000000e+00 : f32
    %149 = vector.broadcast %cst_53 : f32 to vector<2x128xf32>
    %150 = arith.addf %149, %148 : vector<2x128xf32>
    %151 = arith.divf %149, %150 : vector<2x128xf32>
    %152 = math.tanh %146 : vector<2x128xf32>
    %153 = vector.extract_strided_slice %151 {offsets = [0, 0], sizes = [2, 32], strides = [1, 1]} : vector<2x128xf32> to vector<2x32xf32>
    %154 = vector.extract_strided_slice %151 {offsets = [0, 32], sizes = [2, 32], strides = [1, 1]} : vector<2x128xf32> to vector<2x32xf32>
    %155 = vector.extract_strided_slice %152 {offsets = [0, 64], sizes = [2, 32], strides = [1, 1]} : vector<2x128xf32> to vector<2x32xf32>
    %156 = vector.extract_strided_slice %151 {offsets = [0, 96], sizes = [2, 32], strides = [1, 1]} : vector<2x128xf32> to vector<2x32xf32>
    %157 = arith.mulf %154, %136 : vector<2x32xf32>
    %158 = arith.mulf %153, %155 : vector<2x32xf32>
    %159 = arith.addf %157, %158 : vector<2x32xf32>
    %160 = math.tanh %159 : vector<2x32xf32>
    %161 = arith.mulf %156, %160 : vector<2x32xf32>
    %162 = vector.broadcast %48 : vector<1x32xf32> to vector<2x32xf32>
    %163 = arith.mulf %161, %162 : vector<2x32xf32>
    %cst_54 = arith.constant dense<0.000000e+00> : vector<2xf32>
    %164 = vector.multi_reduction <add>, %163, %cst_54 [1] : vector<2x32xf32> to vector<2xf32>
    %165 = vector.shape_cast %164 : vector<2xf32> to vector<2x1xf32>
    %166 = vector.extract_strided_slice %39 {offsets = [0, 5, 0], sizes = [2, 1, 128], strides = [1, 1, 1]} : vector<2x8x128xf32> to vector<2x1x128xf32>
    %167 = vector.shape_cast %166 : vector<2x1x128xf32> to vector<2x128xf32>
    %cst_55 = arith.constant dense<0.000000e+00> : vector<2x128xf32>
    %168 = tpu.matmul %161, %47, %cst_55 {dimension_numbers = #tpu.dot_dimension_numbers<[1], [0], [0], [1], [0, 0, 1, 1], [], []>} : vector<2x32xf32>, vector<32x128xf32>, vector<2x128xf32> -> vector<2x128xf32>
    %169 = arith.addf %167, %168 : vector<2x128xf32>
    %170 = arith.negf %169 : vector<2x128xf32>
    %171 = math.exp %170 : vector<2x128xf32>
    %cst_56 = arith.constant 1.000000e+00 : f32
    %172 = vector.broadcast %cst_56 : f32 to vector<2x128xf32>
    %173 = arith.addf %172, %171 : vector<2x128xf32>
    %174 = arith.divf %172, %173 : vector<2x128xf32>
    %175 = math.tanh %169 : vector<2x128xf32>
    %176 = vector.extract_strided_slice %174 {offsets = [0, 0], sizes = [2, 32], strides = [1, 1]} : vector<2x128xf32> to vector<2x32xf32>
    %177 = vector.extract_strided_slice %174 {offsets = [0, 32], sizes = [2, 32], strides = [1, 1]} : vector<2x128xf32> to vector<2x32xf32>
    %178 = vector.extract_strided_slice %175 {offsets = [0, 64], sizes = [2, 32], strides = [1, 1]} : vector<2x128xf32> to vector<2x32xf32>
    %179 = vector.extract_strided_slice %174 {offsets = [0, 96], sizes = [2, 32], strides = [1, 1]} : vector<2x128xf32> to vector<2x32xf32>
    %180 = arith.mulf %177, %159 : vector<2x32xf32>
    %181 = arith.mulf %176, %178 : vector<2x32xf32>
    %182 = arith.addf %180, %181 : vector<2x32xf32>
    %183 = math.tanh %182 : vector<2x32xf32>
    %184 = arith.mulf %179, %183 : vector<2x32xf32>
    %185 = vector.broadcast %48 : vector<1x32xf32> to vector<2x32xf32>
    %186 = arith.mulf %184, %185 : vector<2x32xf32>
    %cst_57 = arith.constant dense<0.000000e+00> : vector<2xf32>
    %187 = vector.multi_reduction <add>, %186, %cst_57 [1] : vector<2x32xf32> to vector<2xf32>
    %188 = vector.shape_cast %187 : vector<2xf32> to vector<2x1xf32>
    %189 = vector.extract_strided_slice %39 {offsets = [0, 6, 0], sizes = [2, 1, 128], strides = [1, 1, 1]} : vector<2x8x128xf32> to vector<2x1x128xf32>
    %190 = vector.shape_cast %189 : vector<2x1x128xf32> to vector<2x128xf32>
    %cst_58 = arith.constant dense<0.000000e+00> : vector<2x128xf32>
    %191 = tpu.matmul %184, %47, %cst_58 {dimension_numbers = #tpu.dot_dimension_numbers<[1], [0], [0], [1], [0, 0, 1, 1], [], []>} : vector<2x32xf32>, vector<32x128xf32>, vector<2x128xf32> -> vector<2x128xf32>
    %192 = arith.addf %190, %191 : vector<2x128xf32>
    %193 = arith.negf %192 : vector<2x128xf32>
    %194 = math.exp %193 : vector<2x128xf32>
    %cst_59 = arith.constant 1.000000e+00 : f32
    %195 = vector.broadcast %cst_59 : f32 to vector<2x128xf32>
    %196 = arith.addf %195, %194 : vector<2x128xf32>
    %197 = arith.divf %195, %196 : vector<2x128xf32>
    %198 = math.tanh %192 : vector<2x128xf32>
    %199 = vector.extract_strided_slice %197 {offsets = [0, 0], sizes = [2, 32], strides = [1, 1]} : vector<2x128xf32> to vector<2x32xf32>
    %200 = vector.extract_strided_slice %197 {offsets = [0, 32], sizes = [2, 32], strides = [1, 1]} : vector<2x128xf32> to vector<2x32xf32>
    %201 = vector.extract_strided_slice %198 {offsets = [0, 64], sizes = [2, 32], strides = [1, 1]} : vector<2x128xf32> to vector<2x32xf32>
    %202 = vector.extract_strided_slice %197 {offsets = [0, 96], sizes = [2, 32], strides = [1, 1]} : vector<2x128xf32> to vector<2x32xf32>
    %203 = arith.mulf %200, %182 : vector<2x32xf32>
    %204 = arith.mulf %199, %201 : vector<2x32xf32>
    %205 = arith.addf %203, %204 : vector<2x32xf32>
    %206 = math.tanh %205 : vector<2x32xf32>
    %207 = arith.mulf %202, %206 : vector<2x32xf32>
    %208 = vector.broadcast %48 : vector<1x32xf32> to vector<2x32xf32>
    %209 = arith.mulf %207, %208 : vector<2x32xf32>
    %cst_60 = arith.constant dense<0.000000e+00> : vector<2xf32>
    %210 = vector.multi_reduction <add>, %209, %cst_60 [1] : vector<2x32xf32> to vector<2xf32>
    %211 = vector.shape_cast %210 : vector<2xf32> to vector<2x1xf32>
    %212 = vector.extract_strided_slice %39 {offsets = [0, 7, 0], sizes = [2, 1, 128], strides = [1, 1, 1]} : vector<2x8x128xf32> to vector<2x1x128xf32>
    %213 = vector.shape_cast %212 : vector<2x1x128xf32> to vector<2x128xf32>
    %cst_61 = arith.constant dense<0.000000e+00> : vector<2x128xf32>
    %214 = tpu.matmul %207, %47, %cst_61 {dimension_numbers = #tpu.dot_dimension_numbers<[1], [0], [0], [1], [0, 0, 1, 1], [], []>} : vector<2x32xf32>, vector<32x128xf32>, vector<2x128xf32> -> vector<2x128xf32>
    %215 = arith.addf %213, %214 : vector<2x128xf32>
    %216 = arith.negf %215 : vector<2x128xf32>
    %217 = math.exp %216 : vector<2x128xf32>
    %cst_62 = arith.constant 1.000000e+00 : f32
    %218 = vector.broadcast %cst_62 : f32 to vector<2x128xf32>
    %219 = arith.addf %218, %217 : vector<2x128xf32>
    %220 = arith.divf %218, %219 : vector<2x128xf32>
    %221 = math.tanh %215 : vector<2x128xf32>
    %222 = vector.extract_strided_slice %220 {offsets = [0, 0], sizes = [2, 32], strides = [1, 1]} : vector<2x128xf32> to vector<2x32xf32>
    %223 = vector.extract_strided_slice %220 {offsets = [0, 32], sizes = [2, 32], strides = [1, 1]} : vector<2x128xf32> to vector<2x32xf32>
    %224 = vector.extract_strided_slice %221 {offsets = [0, 64], sizes = [2, 32], strides = [1, 1]} : vector<2x128xf32> to vector<2x32xf32>
    %225 = vector.extract_strided_slice %220 {offsets = [0, 96], sizes = [2, 32], strides = [1, 1]} : vector<2x128xf32> to vector<2x32xf32>
    %226 = arith.mulf %223, %205 : vector<2x32xf32>
    %227 = arith.mulf %222, %224 : vector<2x32xf32>
    %228 = arith.addf %226, %227 : vector<2x32xf32>
    %229 = math.tanh %228 : vector<2x32xf32>
    %230 = arith.mulf %225, %229 : vector<2x32xf32>
    %231 = vector.broadcast %48 : vector<1x32xf32> to vector<2x32xf32>
    %232 = arith.mulf %230, %231 : vector<2x32xf32>
    %cst_63 = arith.constant dense<0.000000e+00> : vector<2xf32>
    %233 = vector.multi_reduction <add>, %232, %cst_63 [1] : vector<2x32xf32> to vector<2xf32>
    %234 = vector.shape_cast %233 : vector<2xf32> to vector<2x1xf32>
    %235 = tpu.concatenate %73, %96, %119, %142, %165, %188, %211, %234 in 1 : vector<2x1xf32>, vector<2x1xf32>, vector<2x1xf32>, vector<2x1xf32>, vector<2x1xf32>, vector<2x1xf32>, vector<2x1xf32>, vector<2x1xf32> -> vector<2x8xf32>
    %236 = arith.addf %235, %46 : vector<2x8xf32>
    %c0_64 = arith.constant 0 : index
    %c0_65 = arith.constant 0 : index
    %237 = vector.load %arg15[%c0_64, %c0_65] : memref<1x1xf32, #tpu.memory_space<vmem>>, vector<1x1xf32>
    %238 = vector.broadcast %237 : vector<1x1xf32> to vector<2x8xf32>
    %239 = arith.addf %236, %238 : vector<2x8xf32>
    %240 = arith.negf %239 : vector<2x8xf32>
    %241 = math.exp %240 : vector<2x8xf32>
    %cst_66 = arith.constant 1.000000e+00 : f32
    %242 = vector.broadcast %cst_66 : f32 to vector<2x8xf32>
    %243 = arith.addf %242, %241 : vector<2x8xf32>
    %244 = arith.divf %242, %243 : vector<2x8xf32>
    %c0_67 = arith.constant 0 : index
    %c0_68 = arith.constant 0 : index
    %245 = vector.load %arg16[%c0_67, %c0_68] : memref<2x8xf32, #tpu.memory_space<vmem>>, vector<2x8xf32>
    tpu.vector_store %arg16[%c0_67, %c0_68], %244 {strides = array<i32>} : memref<2x8xf32, #tpu.memory_space<vmem>>, vector<2x8xf32>,
    return
  }
}

</mosaic_0001>

<bundles_post_ra>
// kernel: cndtn_dcgan_lstm_forward.1
= control target key start
LH: loop header
LB: loop body
LE: loop exit
PB: predicated region body
PF: predicated region fallthrough
CT: control target
= control target key end

     0   :  { %s4973_s0 = inlined_call_operand.vmem [shape: bf16[16,1024], index: 0, kind: input, shape index: {}]   ;;  %s4974_s1 = inlined_call_operand.vmem [shape: bf16[16,1024], index: 1, kind: input, shape index: {}]   ;;  %s4975_s2 = inlined_call_operand.vmem [shape: bf16[1024,128], index: 2, kind: input, shape index: {}]   ;;  %s4976_s3 = inlined_call_operand.vmem [shape: bf16[128,32], index: 3, kind: input, shape index: {}]   ;;  %s4977_s4 = inlined_call_operand.vmem [shape: f32[1,128], index: 4, kind: input, shape index: {}]   ;;  %s4978_s5 = inlined_call_operand.vmem [shape: f32[1,32], index: 5, kind: input, shape index: {}]   ;;  %s4979_s6 = inlined_call_operand.vmem [shape: bf16[1024,128], index: 6, kind: input, shape index: {}]   ;;  %s4980_s7 = inlined_call_operand.vmem [shape: bf16[128,32], index: 7, kind: input, shape index: {}]   ;;  %s4981_s8 = inlined_call_operand.vmem [shape: f32[1,128], index: 8, kind: input, shape index: {}]   ;;  %s4982_s9 = inlined_call_operand.vmem [shape: f32[1,32], index: 9, kind: input, shape index: {}]   ;;  %s4983_s10 = inlined_call_operand.vmem [shape: bf16[32,128], index: 10, kind: input, shape index: {}]   ;;  %s4984_s11 = inlined_call_operand.vmem [shape: f32[1,128], index: 11, kind: input, shape index: {}]   ;;  %s4985_s12 = inlined_call_operand.vmem [shape: f32[1,32], index: 12, kind: input, shape index: {}]   ;;  %s4986_s13 = inlined_call_operand.vmem [shape: f32[32,128], index: 13, kind: input, shape index: {}]   ;;  %s4987_s14 = inlined_call_operand.vmem [shape: f32[1,32], index: 14, kind: input, shape index: {}]   ;;  %s4988_s15 = inlined_call_operand.<no memory space> [shape: f32[1,1], index: 15, kind: input, shape index: {}]   ;;  %s4989_s16 = inlined_call_operand.hbm [shape: f32[2,8], index: 16, kind: output, shape index: {}]  }
   0x1   :  { %4991 = sst [smem:[#allocation6_spill]] %s4973_s0  ;;  %v21_v0 = vstv %s4988_s15 }
   0x2   :  { %22 = vst [vmem:[#allocation2] sm:$0x1] %v21_v0 }
   0x3   :  { %v3787_v1 = vld [vmem:[%s4975_s2 + $0x40] sm:$0xff]   ;;  %v3791_v5 = vld [vmem:[%s4975_s2 + $0x48] sm:$0xff]   ;;  %v3795_v9 = vld [vmem:[%s4975_s2 + $0x50] sm:$0xff]   ;;  %s4992_s25 = sld [smem:[#allocation6_spill]] }
   0x4   :  { %v3788_v2 = vld [vmem:[%s4975_s2 + $0xc0] sm:$0xff]   ;;  %3356 = vmatprep.subr.bf16.mxu0 %v3787_v1  ;;  %v3792_v6 = vld [vmem:[%s4975_s2 + $0xc8] sm:$0xff]   ;;  %v3796_v10 = vld [vmem:[%s4975_s2 + $0xd0] sm:$0xff]  }
   0x5   :  { %v3789_v3 = vld [vmem:[%s4975_s2] sm:$0xff]   ;;  %3378 = vmatprep.subr.bf16.mxu1 %v3788_v2  ;;  %v3793_v7 = vld [vmem:[%s4975_s2 + $0x8] sm:$0xff]   ;;  %v3797_v11 = vld [vmem:[%s4975_s2 + $0x10] sm:$0xff]  }
   0x6   :  { %v3790_v4 = vld [vmem:[%s4975_s2 + $0x80] sm:$0xff]   ;;  %3357 = vmatpush3.bf16.msra.mxu0 %v3789_v3  ;;  %v3794_v8 = vld [vmem:[%s4975_s2 + $0x88] sm:$0xff]   ;;  %v3798_v12 = vld [vmem:[%s4975_s2 + $0x90] sm:$0xff]  }
   0x7   :  { %3379 = vmatpush3.bf16.msra.mxu1 %v3790_v4  ;;  %3358 = vmatprep.subr.bf16.mxu0 %v3791_v5  ;;  %v3799_v13 = vld [vmem:[%s4975_s2 + $0x58] sm:$0xff]   ;;  %v3803_v17 = vld [vmem:[%s4975_s2 + $0x60] sm:$0xff]   ;;  %v3807_v21 = vld [vmem:[%s4975_s2 + $0x68] sm:$0xff]  }
   0x8   :  { %3380 = vmatprep.subr.bf16.mxu1 %v3792_v6  ;;  %v3800_v14 = vld [vmem:[%s4975_s2 + $0xd8] sm:$0xff]   ;;  %v3804_v18 = vld [vmem:[%s4975_s2 + $0xe0] sm:$0xff]   ;;  %v3808_v22 = vld [vmem:[%s4975_s2 + $0xe8] sm:$0xff]  }
   0x9   :  { %v3801_v15 = vld [vmem:[%s4975_s2 + $0x18] sm:$0xff]   ;;  %v3805_v19 = vld [vmem:[%s4975_s2 + $0x20] sm:$0xff]   ;;  %v3809_v23 = vld [vmem:[%s4975_s2 + $0x28] sm:$0xff]  }
   0xa   :  { %3359 = vmatpush3.bf16.msra.mxu0 %v3793_v7  ;;  %v3802_v16 = vld [vmem:[%s4975_s2 + $0x98] sm:$0xff]   ;;  %v3806_v20 = vld [vmem:[%s4975_s2 + $0xa0] sm:$0xff]   ;;  %v3810_v24 = vld [vmem:[%s4975_s2 + $0xa8] sm:$0xff]  }
   0xb   :  { %3381 = vmatpush3.bf16.msra.mxu1 %v3794_v8  ;;  %3360 = vmatprep.subr.bf16.mxu0 %v3795_v9  ;;  %v3811_v25 = vld [vmem:[%s4975_s2 + $0x70] sm:$0xff]   ;;  %v3815_v29 = vld [vmem:[%s4975_s2 + $0x78] sm:$0xff]   ;;  %v57_v33 = vld [vmem:[%s4992_s25] sm:$0xff] }
   0xc   :  { %3382 = vmatprep.subr.bf16.mxu1 %v3796_v10  ;;  %v3812_v26 = vld [vmem:[%s4975_s2 + $0xf0] sm:$0xff]   ;;  %v3816_v30 = vld [vmem:[%s4975_s2 + $0xf8] sm:$0xff]   ;;  %v61_v34 = vld [vmem:[%s4992_s25 + $0x20] sm:$0xff] }
   0xd   :  { %v3813_v27 = vld [vmem:[%s4975_s2 + $0x30] sm:$0xff]   ;;  %v3817_v31 = vld [vmem:[%s4975_s2 + $0x38] sm:$0xff]   ;;  %v58_v35 = vld [vmem:[%s4992_s25 + $0x8] sm:$0xff]  ;;  %v3162_v36 = vcombine.low %v57_v33, %v61_v34  ;;  %v3163_v37 = vcombine.high %v57_v33, %v61_v34 }
   0xe   :  { %3361 = vmatpush3.bf16.msra.mxu0 %v3797_v11  ;;  %v3814_v28 = vld [vmem:[%s4975_s2 + $0xb0] sm:$0xff]   ;;  %v3818_v32 = vld [vmem:[%s4975_s2 + $0xb8] sm:$0xff]   ;;  %v62_v38 = vld [vmem:[%s4992_s25 + $0x28] sm:$0xff] }
   0xf   :  { %3383 = vmatpush3.bf16.msra.mxu1 %v3798_v12  ;;  %3362 = vmatprep.subr.bf16.mxu0 %v3799_v13  ;;  %v3164_v39 = vcombine.low %v58_v35, %v62_v38  ;;  %v3165_v40 = vcombine.high %v58_v35, %v62_v38  ;;  %v3819_v41 = vld [vmem:[%s4975_s2 + $0x140] sm:$0xff]   ;;  %v3823_v45 = vld [vmem:[%s4975_s2 + $0x148] sm:$0xff]   ;;  %v3827_v49 = vld [vmem:[%s4975_s2 + $0x150] sm:$0xff]  }
  0x10   :  { %3384 = vmatprep.subr.bf16.mxu1 %v3800_v14  ;;  %664 = vmatprep.mubr.bf16.mxu0 %v3163_v37  ;;  %v3820_v42 = vld [vmem:[%s4975_s2 + $0x1c0] sm:$0xff]   ;;  %v3824_v46 = vld [vmem:[%s4975_s2 + $0x1c8] sm:$0xff]   ;;  %v3828_v50 = vld [vmem:[%s4975_s2 + $0x1d0] sm:$0xff]  }
  0x11   :  { %705 = vmatprep.mubr.bf16.mxu1 %v3165_v40  ;;  %v3821_v43 = vld [vmem:[%s4975_s2 + $0x100] sm:$0xff]   ;;  %v3825_v47 = vld [vmem:[%s4975_s2 + $0x108] sm:$0xff]   ;;  %v3829_v51 = vld [vmem:[%s4975_s2 + $0x110] sm:$0xff]  }
  0x12   :  { %3363 = vmatpush3.bf16.msra.mxu0 %v3801_v15  ;;  %v3822_v44 = vld [vmem:[%s4975_s2 + $0x180] sm:$0xff]   ;;  %v3826_v48 = vld [vmem:[%s4975_s2 + $0x188] sm:$0xff]   ;;  %v3830_v52 = vld [vmem:[%s4975_s2 + $0x190] sm:$0xff]  }
  0x13   :  { %3385 = vmatpush3.bf16.msra.mxu1 %v3802_v16  ;;  %3364 = vmatprep.subr.bf16.mxu0 %v3803_v17  ;;  %v3831_v53 = vld [vmem:[%s4975_s2 + $0x158] sm:$0xff]   ;;  %v3835_v57 = vld [vmem:[%s4975_s2 + $0x160] sm:$0xff]   ;;  %v3839_v61 = vld [vmem:[%s4975_s2 + $0x168] sm:$0xff]  }
  0x14   :  { %3386 = vmatprep.subr.bf16.mxu1 %v3804_v18  ;;  %v3832_v54 = vld [vmem:[%s4975_s2 + $0x1d8] sm:$0xff]   ;;  %v3836_v58 = vld [vmem:[%s4975_s2 + $0x1e0] sm:$0xff]   ;;  %v3840_v62 = vld [vmem:[%s4975_s2 + $0x1e8] sm:$0xff]  }
  0x15   :  { %v3833_v55 = vld [vmem:[%s4975_s2 + $0x118] sm:$0xff]   ;;  %v3837_v59 = vld [vmem:[%s4975_s2 + $0x120] sm:$0xff]   ;;  %v3841_v63 = vld [vmem:[%s4975_s2 + $0x128] sm:$0xff]  }
  0x16   :  { %3365 = vmatpush3.bf16.msra.mxu0 %v3805_v19  ;;  %v3834_v56 = vld [vmem:[%s4975_s2 + $0x198] sm:$0xff]   ;;  %v3838_v60 = vld [vmem:[%s4975_s2 + $0x1a0] sm:$0xff]   ;;  %v3842_v0 = vld [vmem:[%s4975_s2 + $0x1a8] sm:$0xff]  }
  0x17   :  { %3387 = vmatpush3.bf16.msra.mxu1 %v3806_v20  ;;  %3366 = vmatprep.subr.bf16.mxu0 %v3807_v21  ;;  %v3843_v1 = vld [vmem:[%s4975_s2 + $0x170] sm:$0xff]   ;;  %v3847_v5 = vld [vmem:[%s4975_s2 + $0x178] sm:$0xff]   ;;  %v3851_v17 = vld [vmem:[%s4979_s6 + $0x40] sm:$0xff]  }
  0x18   :  { %3388 = vmatprep.subr.bf16.mxu1 %v3808_v22  ;;  %v3844_v2 = vld [vmem:[%s4975_s2 + $0x1f0] sm:$0xff]   ;;  %v3848_v6 = vld [vmem:[%s4975_s2 + $0x1f8] sm:$0xff]   ;;  %v3852_v18 = vld [vmem:[%s4979_s6] sm:$0xff]  }
  0x19   :  { %v3845_v3 = vld [vmem:[%s4975_s2 + $0x130] sm:$0xff]   ;;  %v3849_v7 = vld [vmem:[%s4975_s2 + $0x138] sm:$0xff]   ;;  %v3853_v19 = vld [vmem:[%s4979_s6 + $0xc0] sm:$0xff]  }
  0x1a   :  { %3367 = vmatpush3.bf16.msra.mxu0 %v3809_v23  ;;  %v3846_v4 = vld [vmem:[%s4975_s2 + $0x1b0] sm:$0xff]   ;;  %v3850_v8 = vld [vmem:[%s4975_s2 + $0x1b8] sm:$0xff]   ;;  %v3854_v20 = vld [vmem:[%s4979_s6 + $0x80] sm:$0xff]  }
  0x1b   :  { %3389 = vmatpush3.bf16.msra.mxu1 %v3810_v24  ;;  %3368 = vmatprep.subr.bf16.mxu0 %v3811_v25  ;;  %v59_v9 = vld [vmem:[%s4992_s25 + $0x10] sm:$0xff]  ;;  %v60_v13 = vld [vmem:[%s4992_s25 + $0x18] sm:$0xff]  ;;  %v3855_v21 = vld [vmem:[%s4979_s6 + $0x48] sm:$0xff]  }
  0x1c   :  { %3390 = vmatprep.subr.bf16.mxu1 %v3812_v26  ;;  %v63_v10 = vld [vmem:[%s4992_s25 + $0x30] sm:$0xff]  ;;  %v64_v14 = vld [vmem:[%s4992_s25 + $0x38] sm:$0xff]  ;;  %v3856_v22 = vld [vmem:[%s4979_s6 + $0x8] sm:$0xff]  }
  0x1d   :  { %v3166_v11 = vcombine.low %v59_v9, %v63_v10  ;;  %v3167_v12 = vcombine.high %v59_v9, %v63_v10  ;;  %v3168_v15 = vcombine.low %v60_v13, %v64_v14  ;;  %v3169_v16 = vcombine.high %v60_v13, %v64_v14  ;;  %v3857_v23 = vld [vmem:[%s4979_s6 + $0xc8] sm:$0xff]   ;;  %v3859_v25 = vld [vmem:[%s4979_s6 + $0x50] sm:$0xff]   ;;  %v3867_v33 = vld [vmem:[%s4979_s6 + $0x60] sm:$0xff]  }
  0x1e   :  { %3369 = vmatpush3.bf16.msra.mxu0 %v3813_v27  ;;  %v3858_v24 = vld [vmem:[%s4979_s6 + $0x88] sm:$0xff]   ;;  %v3860_v26 = vld [vmem:[%s4979_s6 + $0x10] sm:$0xff]   ;;  %v3868_v34 = vld [vmem:[%s4979_s6 + $0x20] sm:$0xff]  }
  0x1f   :  { %3391 = vmatpush3.bf16.msra.mxu1 %v3814_v28  ;;  %3370 = vmatprep.subr.bf16.mxu0 %v3815_v29  ;;  %v3861_v27 = vld [vmem:[%s4979_s6 + $0xd0] sm:$0xff]   ;;  %v3863_v29 = vld [vmem:[%s4979_s6 + $0x58] sm:$0xff]   ;;  %v3869_v35 = vld [vmem:[%s4979_s6 + $0xe0] sm:$0xff]  }
  0x20   :  { %3392 = vmatprep.subr.bf16.mxu1 %v3816_v30  ;;  %v3862_v28 = vld [vmem:[%s4979_s6 + $0x90] sm:$0xff]   ;;  %v3864_v30 = vld [vmem:[%s4979_s6 + $0x18] sm:$0xff]   ;;  %v3871_v37 = vld [vmem:[%s4979_s6 + $0x68] sm:$0xff]  }
  0x21   :  { %v3872_v38 = vld [vmem:[%s4979_s6 + $0x28] sm:$0xff]   ;;  %v3899_v9 = vld [vmem:[%s4979_s6 + $0x160] sm:$0xff]  }
  0x22   :  { %3371 = vmatpush3.bf16.msra.mxu0 %v3817_v31  ;;  %v3865_v31 = vld [vmem:[%s4979_s6 + $0xd8] sm:$0xff]   ;;  %v3874_v40 = vld [vmem:[%s4979_s6 + $0xa8] sm:$0xff]   ;;  %v3900_v10 = vld [vmem:[%s4979_s6 + $0x120] sm:$0xff]  }
  0x23   :  { %3393 = vmatpush3.bf16.msra.mxu1 %v3818_v32  ;;  %3400 = vmatprep.subr.bf16.mxu0 %v3819_v41  ;;  %v3866_v32 = vld [vmem:[%s4979_s6 + $0x98] sm:$0xff]   ;;  %v3875_v41 = vld [vmem:[%s4979_s6 + $0x70] sm:$0xff]   ;;  %v3903_v13 = vld [vmem:[%s4979_s6 + $0x168] sm:$0xff]  }
  0x24   :  { %3422 = vmatprep.subr.bf16.mxu1 %v3820_v42  ;;  %v3876_v42 = vld [vmem:[%s4979_s6 + $0x30] sm:$0xff]   ;;  %v3904_v14 = vld [vmem:[%s4979_s6 + $0x128] sm:$0xff]  }
  0x25   :  { %665 = vmatmul.mubr.bf16.vlgmr.msra.gmra.mrb[0].mxu0 %v3162_v36  ;;  %v3870_v36 = vld [vmem:[%s4979_s6 + $0xa0] sm:$0xff]  }
  0x26   :  { %706 = vmatmul.mubr.bf16.vlgmr.msra.gmra.mrb[0].mxu1 %v3164_v39  ;;  %3401 = vmatpush3.bf16.msra.mxu0 %v3821_v43  ;;  %v3873_v39 = vld [vmem:[%s4979_s6 + $0xe8] sm:$0xff]   ;;  %v3877_v43 = vld [vmem:[%s4979_s6 + $0xf0] sm:$0xff]  }
  0x27   :  { %3423 = vmatpush3.bf16.msra.mxu1 %v3822_v44  ;;  %3402 = vmatprep.subr.bf16.mxu0 %v3823_v45  ;;  %v3878_v44 = vld [vmem:[%s4979_s6 + $0xb0] sm:$0xff]   ;;  %v3879_v45 = vld [vmem:[%s4979_s6 + $0x78] sm:$0xff]  }
  0x28   :  { %3424 = vmatprep.subr.bf16.mxu1 %v3824_v46  ;;  %746 = vmatprep.mubr.bf16.mxu0 %v3167_v12  ;;  %v3880_v46 = vld [vmem:[%s4979_s6 + $0x38] sm:$0xff]   ;;  %v3902_v12 = vld [vmem:[%s4979_s6 + $0x1a0] sm:$0xff]  }
  0x29   :  { %787 = vmatprep.mubr.bf16.mxu1 %v3169_v16  ;;  %v3906_v16 = vld [vmem:[%s4979_s6 + $0x1a8] sm:$0xff]  }
  0x2a   :  { %3403 = vmatpush3.bf16.msra.mxu0 %v3825_v47  ;;  %v3881_v47 = vld [vmem:[%s4979_s6 + $0xf8] sm:$0xff]  }
  0x2b   :  { %3425 = vmatpush3.bf16.msra.mxu1 %v3826_v48  ;;  %3404 = vmatprep.subr.bf16.mxu0 %v3827_v49  ;;  %v3882_v48 = vld [vmem:[%s4979_s6 + $0xb8] sm:$0xff]   ;;  %v65_v49 = vld [vmem:[%s4974_s1] sm:$0xff] }
  0x2c   :  { %3426 = vmatprep.subr.bf16.mxu1 %v3828_v50  ;;  %v69_v50 = vld [vmem:[%s4974_s1 + $0x20] sm:$0xff] }
  0x2e   :  { %3405 = vmatpush3.bf16.msra.mxu0 %v3829_v51  ;;  %v3235_v51 = vcombine.low %v65_v49, %v69_v50 }
  0x2f   :  { %3427 = vmatpush3.bf16.msra.mxu1 %v3830_v52  ;;  %3406 = vmatprep.subr.bf16.mxu0 %v3831_v53  ;;  %v3236_v52 = vcombine.high %v65_v49, %v69_v50  ;;  %v3883_v53 = vld [vmem:[%s4979_s6 + $0x140] sm:$0xff]  }
  0x30   :  { %3428 = vmatprep.subr.bf16.mxu1 %v3832_v54  ;;  %v3884_v54 = vld [vmem:[%s4979_s6 + $0x100] sm:$0xff]  }
  0x32   :  { %3407 = vmatpush3.bf16.msra.mxu0 %v3833_v55  ;;  %v66_v55 = vld [vmem:[%s4974_s1 + $0x8] sm:$0xff] }
  0x33   :  { %3429 = vmatpush3.bf16.msra.mxu1 %v3834_v56  ;;  %3408 = vmatprep.subr.bf16.mxu0 %v3835_v57  ;;  %v70_v56 = vld [vmem:[%s4974_s1 + $0x28] sm:$0xff] }
  0x34   :  { %3430 = vmatprep.subr.bf16.mxu1 %v3836_v58  ;;  %v3237_v57 = vcombine.low %v66_v55, %v70_v56  ;;  %v3238_v58 = vcombine.high %v66_v55, %v70_v56 }
  0x36   :  { %3409 = vmatpush3.bf16.msra.mxu0 %v3837_v59  ;;  %v3885_v59 = vld [vmem:[%s4979_s6 + $0x1c0] sm:$0xff]  }
  0x37   :  { %3431 = vmatpush3.bf16.msra.mxu1 %v3838_v60  ;;  %3410 = vmatprep.subr.bf16.mxu0 %v3839_v61  ;;  %v3886_v60 = vld [vmem:[%s4979_s6 + $0x180] sm:$0xff]   ;;  %v3887_v61 = vld [vmem:[%s4979_s6 + $0x148] sm:$0xff]  }
  0x38   :  { %3432 = vmatprep.subr.bf16.mxu1 %v3840_v62  ;;  %v3888_v62 = vld [vmem:[%s4979_s6 + $0x108] sm:$0xff]  }
  0x3a   :  { %3411 = vmatpush3.bf16.msra.mxu0 %v3841_v63  ;;  %v3889_v63 = vld [vmem:[%s4979_s6 + $0x1c8] sm:$0xff]  }
  0x3b   :  { %3433 = vmatpush3.bf16.msra.mxu1 %v3842_v0  ;;  %3412 = vmatprep.subr.bf16.mxu0 %v3843_v1  ;;  %v3890_v0 = vld [vmem:[%s4979_s6 + $0x188] sm:$0xff]   ;;  %v3891_v1 = vld [vmem:[%s4979_s6 + $0x150] sm:$0xff]  }
  0x3c   :  { %3434 = vmatprep.subr.bf16.mxu1 %v3844_v2  ;;  %v3892_v2 = vld [vmem:[%s4979_s6 + $0x110] sm:$0xff]  }
  0x3e   :  { %3413 = vmatpush3.bf16.msra.mxu0 %v3845_v3  ;;  %v3893_v3 = vld [vmem:[%s4979_s6 + $0x1d0] sm:$0xff]  }
  0x3f   :  { %3435 = vmatpush3.bf16.msra.mxu1 %v3846_v4  ;;  %3414 = vmatprep.subr.bf16.mxu0 %v3847_v5  ;;  %v3894_v4 = vld [vmem:[%s4979_s6 + $0x190] sm:$0xff]   ;;  %v3895_v5 = vld [vmem:[%s4979_s6 + $0x158] sm:$0xff]  }
  0x40   :  { %3436 = vmatprep.subr.bf16.mxu1 %v3848_v6  ;;  %v3896_v6 = vld [vmem:[%s4979_s6 + $0x118] sm:$0xff]  }
  0x42   :  { %3415 = vmatpush3.bf16.msra.mxu0 %v3849_v7  ;;  %v3897_v7 = vld [vmem:[%s4979_s6 + $0x1d8] sm:$0xff]  }
  0x43   :  { %3437 = vmatpush3.bf16.msra.mxu1 %v3850_v8  ;;  %3444 = vmatprep.subr.bf16.mxu0 %v3851_v17  ;;  %v3898_v8 = vld [vmem:[%s4979_s6 + $0x198] sm:$0xff]   ;;  %v3907_v17 = vld [vmem:[%s4979_s6 + $0x170] sm:$0xff]  }
  0x44   :  { %3466 = vmatprep.subr.bf16.mxu1 %v3853_v19  ;;  %v3909_v19 = vld [vmem:[%s4979_s6 + $0x1f0] sm:$0xff]  }
  0x45   :  { %747 = vmatmul.mubr.bf16.vlgmr.msra.gmra.mrb[4].mxu0 %v3166_v11  ;;  %v3901_v11 = vld [vmem:[%s4979_s6 + $0x1e0] sm:$0xff]  }
  0x46   :  { %788 = vmatmul.mubr.bf16.vlgmr.msra.gmra.mrb[4].mxu1 %v3168_v15  ;;  %3445 = vmatpush3.bf16.msra.mxu0 %v3852_v18  ;;  %v3905_v15 = vld [vmem:[%s4979_s6 + $0x1e8] sm:$0xff]   ;;  %v3908_v18 = vld [vmem:[%s4979_s6 + $0x130] sm:$0xff]  }
  0x47   :  { %3467 = vmatpush3.bf16.msra.mxu1 %v3854_v20  ;;  %3446 = vmatprep.subr.bf16.mxu0 %v3855_v21  ;;  %v3910_v20 = vld [vmem:[%s4979_s6 + $0x1b0] sm:$0xff]   ;;  %v3911_v21 = vld [vmem:[%s4979_s6 + $0x178] sm:$0xff]  }
  0x48   :  { %3468 = vmatprep.subr.bf16.mxu1 %v3857_v23  ;;  %1390 = vmatprep.mubr.bf16.mxu0 %v3236_v52  ;;  %v3913_v23 = vld [vmem:[%s4979_s6 + $0x1f8] sm:$0xff]  }
  0x49   :  { %1431 = vmatprep.mubr.bf16.mxu1 %v3238_v58 }
  0x4a   :  { %3447 = vmatpush3.bf16.msra.mxu0 %v3856_v22  ;;  %v3912_v22 = vld [vmem:[%s4979_s6 + $0x138] sm:$0xff]  }
  0x4b   :  { %3469 = vmatpush3.bf16.msra.mxu1 %v3858_v24  ;;  %3448 = vmatprep.subr.bf16.mxu0 %v3859_v25  ;;  %v67_v24 = vld [vmem:[%s4974_s1 + $0x10] sm:$0xff] }
  0x4c   :  { %3470 = vmatprep.subr.bf16.mxu1 %v3861_v27  ;;  %v71_v25 = vld [vmem:[%s4974_s1 + $0x30] sm:$0xff] }
  0x4d   :  { %v3240_v27 = vcombine.high %v67_v24, %v71_v25 }
  0x4e   :  { %3449 = vmatpush3.bf16.msra.mxu0 %v3860_v26  ;;  %v3239_v26 = vcombine.low %v67_v24, %v71_v25 }
  0x4f   :  { %3471 = vmatpush3.bf16.msra.mxu1 %v3862_v28  ;;  %3450 = vmatprep.subr.bf16.mxu0 %v3863_v29  ;;  %v3914_v28 = vld [vmem:[%s4979_s6 + $0x1b8] sm:$0xff]  }
  0x50   :  { %3472 = vmatprep.subr.bf16.mxu1 %v3865_v31  ;;  %v68_v29 = vld [vmem:[%s4974_s1 + $0x18] sm:$0xff]  ;;  %v4089_v31 = vmov 0.0  }
  0x52   :  { %3451 = vmatpush3.bf16.msra.mxu0 %v3864_v30  ;;  %v72_v30 = vld [vmem:[%s4974_s1 + $0x38] sm:$0xff] }
  0x53   :  { %3473 = vmatpush3.bf16.msra.mxu1 %v3866_v32  ;;  %3452 = vmatprep.subr.bf16.mxu0 %v3867_v33  ;;  %v3241_v32 = vcombine.low %v68_v29, %v72_v30  ;;  %v3242_v33 = vcombine.high %v68_v29, %v72_v30 }
  0x54   :  { %3474 = vmatprep.subr.bf16.mxu1 %v3869_v35  ;;  %v3916_v35 = vld [vmem:[%s4976_s3 + $0x8] sm:$0xff]  }
  0x56   :  { %3453 = vmatpush3.bf16.msra.mxu0 %v3868_v34  ;;  %v3915_v34 = vld [vmem:[%s4976_s3] sm:$0xff]  }
  0x57   :  { %3475 = vmatpush3.bf16.msra.mxu1 %v3870_v36  ;;  %3454 = vmatprep.subr.bf16.mxu0 %v3871_v37  ;;  %v3917_v36 = vld [vmem:[%s4976_s3 + $0x10] sm:$0xff]   ;;  %v3918_v37 = vld [vmem:[%s4976_s3 + $0x18] sm:$0xff]  }
  0x58   :  { %3476 = vmatprep.subr.bf16.mxu1 %v3873_v39 }
  0x5a   :  { %3455 = vmatpush3.bf16.msra.mxu0 %v3872_v38 }
  0x5b   :  { %3477 = vmatpush3.bf16.msra.mxu1 %v3874_v40  ;;  %3456 = vmatprep.subr.bf16.mxu0 %v3875_v41 }
  0x5c   :  { %3478 = vmatprep.subr.bf16.mxu1 %v3877_v43 }
  0x5e   :  { %3457 = vmatpush3.bf16.msra.mxu0 %v3876_v42 }
  0x5f   :  { %3479 = vmatpush3.bf16.msra.mxu1 %v3878_v44  ;;  %3458 = vmatprep.subr.bf16.mxu0 %v3879_v45 }
  0x60   :  { %3480 = vmatprep.subr.bf16.mxu1 %v3881_v47 }
  0x62   :  { %3459 = vmatpush3.bf16.msra.mxu0 %v3880_v46 }
  0x63   :  { %3481 = vmatpush3.bf16.msra.mxu1 %v3882_v48  ;;  %3488 = vmatprep.subr.bf16.mxu0 %v3883_v53 }
  0x64   :  { %3510 = vmatprep.subr.bf16.mxu1 %v3885_v59 }
  0x65   :  { %1391 = vmatmul.mubr.bf16.vlgmr.msra.gmra.mrb[8].mxu0 %v3235_v51 }
  0x66   :  { %3489 = vmatpush3.bf16.msra.mxu0 %v3884_v54  ;;  %1432 = vmatmul.mubr.bf16.vlgmr.msra.gmra.mrb[8].mxu1 %v3237_v57 }
  0x67   :  { %3511 = vmatpush3.bf16.msra.mxu1 %v3886_v60  ;;  %3490 = vmatprep.subr.bf16.mxu0 %v3887_v61 }
  0x68   :  { %3512 = vmatprep.subr.bf16.mxu1 %v3889_v63  ;;  %1472 = vmatprep.mubr.bf16.mxu0 %v3240_v27 }
  0x69   :  { %1513 = vmatprep.mubr.bf16.mxu1 %v3242_v33 }
  0x6a   :  { %3491 = vmatpush3.bf16.msra.mxu0 %v3888_v62 }
  0x6b   :  { %3513 = vmatpush3.bf16.msra.mxu1 %v3890_v0  ;;  %3492 = vmatprep.subr.bf16.mxu0 %v3891_v1 }
  0x6c   :  { %3514 = vmatprep.subr.bf16.mxu1 %v3893_v3 }
  0x6e   :  { %3493 = vmatpush3.bf16.msra.mxu0 %v3892_v2 }
  0x6f   :  { %3515 = vmatpush3.bf16.msra.mxu1 %v3894_v4  ;;  %3494 = vmatprep.subr.bf16.mxu0 %v3895_v5 }
  0x70   :  { %3516 = vmatprep.subr.bf16.mxu1 %v3897_v7 }
  0x72   :  { %3495 = vmatpush3.bf16.msra.mxu0 %v3896_v6 }
  0x73   :  { %3517 = vmatpush3.bf16.msra.mxu1 %v3898_v8  ;;  %3496 = vmatprep.subr.bf16.mxu0 %v3899_v9 }
  0x74   :  { %3518 = vmatprep.subr.bf16.mxu1 %v3901_v11 }
  0x76   :  { %3497 = vmatpush3.bf16.msra.mxu0 %v3900_v10 }
  0x77   :  { %3519 = vmatpush3.bf16.msra.mxu1 %v3902_v12  ;;  %3498 = vmatprep.subr.bf16.mxu0 %v3903_v13 }
  0x78   :  { %3520 = vmatprep.subr.bf16.mxu1 %v3905_v15 }
  0x7a   :  { %3499 = vmatpush3.bf16.msra.mxu0 %v3904_v14 }
  0x7b   :  { %3521 = vmatpush3.bf16.msra.mxu1 %v3906_v16  ;;  %3500 = vmatprep.subr.bf16.mxu0 %v3907_v17 }
  0x7c   :  { %3522 = vmatprep.subr.bf16.mxu1 %v3909_v19 }
  0x7e   :  { %3501 = vmatpush3.bf16.msra.mxu0 %v3908_v18 }
  0x7f   :  { %3523 = vmatpush3.bf16.msra.mxu1 %v3910_v20  ;;  %3502 = vmatprep.subr.bf16.mxu0 %v3911_v21 }
  0x80   :  { %3524 = vmatprep.subr.bf16.mxu1 %v3913_v23 }
  0x82   :  { %3503 = vmatpush3.bf16.msra.mxu0 %v3912_v22 }
  0x83   :  { %3593 = vmatprep.subr.bf16.mxu0 %v4089_v31  ;;  %3525 = vmatpush3.bf16.msra.mxu1 %v3914_v28 }
  0x84   :  { %3613 = vmatprep.subr.bf16.mxu1 %v4089_v31 }
  0x85   :  { %1473 = vmatmul.mubr.bf16.vlgmr.msra.gmra.mrb[12].mxu0 %v3239_v26 }
  0x86   :  { %3594 = vmatpush3.bf16.msra.mxu0 %v3915_v34  ;;  %1514 = vmatmul.mubr.bf16.vlgmr.msra.gmra.mrb[12].mxu1 %v3241_v32 }
  0x87   :  { %3595 = vmatprep.subr.bf16.mxu0 %v4089_v31 }
  0x8a   :  { %3596 = vmatpush3.bf16.msra.mxu0 %v3916_v35 }
  0x8b   :  { %3597 = vmatprep.subr.bf16.mxu0 %v4089_v31 }
  0x8e   :  { %3598 = vmatpush3.bf16.msra.mxu0 %v3917_v36 }
  0x8f   :  { %3599 = vmatprep.subr.bf16.mxu0 %v4089_v31 }
  0x90   :  { %23 = vsyncpa [#allocation4], 0  ;;  %v3919_v38 = vld [vmem:[%s4976_s3 + $0x20] sm:$0xff]   ;;  %v3920_v39 = vld [vmem:[%s4976_s3 + $0x28] sm:$0xff]   ;;  %vm4090_vm0 = vmmov 0   ;;  %vm1778_vm1 = vcmask 261120  }
  0x91   :  { %v3921_v40 = vld [vmem:[%s4976_s3 + $0x30] sm:$0xff]   ;;  %v3922_v41 = vld [vmem:[%s4976_s3 + $0x38] sm:$0xff]   ;;  %3609 = vmatprep.mubr.msk.bf16.mxu0 %vm4090_vm0, %v4089_v31  ;;  %3629 = vmatprep.mubr.msk.bf16.mxu1 %vm4090_vm0, %v4089_v31  ;;  %v3923_v42 = vld [vmem:[%s4980_s7] sm:$0xff]   ;;  %vm1985_vm2 = vcmask 1041409   ;;  %s4094_s29 = smov 96   ;;  %vm2137_vm3 = vcmask 1042434  }
  0x92   :  { %3600 = vmatpush3.bf16.msra.mxu0 %v3918_v37  ;;  %3614 = vmatpush3.bf16.msra.mxu1 %v3923_v42  ;;  %v3924_v43 = vld [vmem:[%s4980_s7 + $0x8] sm:$0xff]   ;;  %v3925_v44 = vld [vmem:[%s4980_s7 + $0x10] sm:$0xff]   ;;  %v3926_v45 = vld [vmem:[%s4980_s7 + $0x18] sm:$0xff]   ;;  %vm1990_vm4 = vcmask 254976   ;;  %vm2142_vm5 = vcmask 256001   ;;  %vm2290_vm6 = vcmask 1043459  }
  0x93   :  { %3601 = vmatprep.subr.bf16.mxu0 %v4089_v31  ;;  %3615 = vmatprep.subr.bf16.mxu1 %v4089_v31  ;;  %v3927_v46 = vld [vmem:[%s4980_s7 + $0x20] sm:$0xff]   ;;  %v3928_v47 = vld [vmem:[%s4980_s7 + $0x28] sm:$0xff]   ;;  %v3929_v48 = vld [vmem:[%s4980_s7 + $0x30] sm:$0xff]   ;;  %vm2598_vm7 = vcmask 1045509   ;;  %vm2752_vm8 = vcmask 1046534   ;;  %vm2444_vm9 = vcmask 1044484  }
  0x94   :  { %v3930_v49 = vld [vmem:[%s4980_s7 + $0x38] sm:$0xff]   ;;  %v3161_v52 = vld [vmem:[%s4977_s4] ss:$0 sm:$0xff]  ;;  %vm2906_vm10 = vcmask 1047559   ;;  %vm2295_vm11 = vcmask 257026   ;;  %vm3099_vm12 = vcmask 7168  }
  0x95   :  { %v3234_v23 = vld [vmem:[%s4981_s8] ss:$0 sm:$0xff]  ;;  %vm2449_vm13 = vcmask 258051   ;;  %vm2603_vm14 = vcmask 259076   ;;  %vm2757_vm15 = vcmask 260101  }
  0x96   :  { %3602 = vmatpush3.bf16.msra.mxu0 %v3919_v38  ;;  %3616 = vmatpush3.bf16.msra.mxu1 %v3924_v43 }
  0x97   :  { %3603 = vmatprep.subr.bf16.mxu0 %v4089_v31  ;;  %3617 = vmatprep.subr.bf16.mxu1 %v4089_v31 }
  0x9a   :  { %3604 = vmatpush3.bf16.msra.mxu0 %v3920_v39  ;;  %3618 = vmatpush3.bf16.msra.mxu1 %v3925_v44 }
  0x9b   :  { %3605 = vmatprep.subr.bf16.mxu0 %v4089_v31  ;;  %3619 = vmatprep.subr.bf16.mxu1 %v4089_v31 }
  0x9e   :  { %3606 = vmatpush3.bf16.msra.mxu0 %v3921_v40  ;;  %3620 = vmatpush3.bf16.msra.mxu1 %v3926_v45 }
  0x9f   :  { %3607 = vmatprep.subr.bf16.mxu0 %v4089_v31  ;;  %3621 = vmatprep.subr.bf16.mxu1 %v4089_v31 }
  0xa2   :  { %3608 = vmatpush3.bf16.msra.mxu0 %v3922_v41  ;;  %3622 = vmatpush3.bf16.msra.mxu1 %v3927_v46 }
  0xa3   :  { %3633 = vmatprep.subr.bf16.mxu0 %v4089_v31  ;;  %3623 = vmatprep.subr.bf16.mxu1 %v4089_v31 }
  0xa6   :  { %3624 = vmatpush3.bf16.msra.mxu1 %v3928_v47 }
  0xa7   :  { %3625 = vmatprep.subr.bf16.mxu1 %v4089_v31 }
  0xaa   :  { %3626 = vmatpush3.bf16.msra.mxu1 %v3929_v48 }
  0xab   :  { %3627 = vmatprep.subr.bf16.mxu1 %v4089_v31 }
  0xae   :  { %3628 = vmatpush3.bf16.msra.mxu1 %v3930_v49 }
  0xf8   :  { %v3372_v50 = vpop.f32.mrb[0].mxu0 }
  0xf9   :  { %v3394_v51 = vpop.f32.mrb[0].mxu1  ;;  %v3373_v53 = vpop.f32.mrb[1].mxu0 }
  0xfa   :  { %v3374_v54 = vadd.f32 %v3373_v53, %v3372_v50  ;;  %v3395_v55 = vpop.f32.mrb[1].mxu1  ;;  %v3375_v56 = vpop.f32.mrb[2].mxu0 }
  0xfb   :  { %v3396_v57 = vadd.f32 %v3395_v55, %v3394_v51  ;;  %v3397_v58 = vpop.f32.mrb[2].mxu1  ;;  %v3376_v59 = vpop.f32.mrb[3].mxu0 }
  0xfc   :  { %v667_v60 = vadd.f32 %v3374_v54, %v3161_v52  ;;  %v3377_v61 = vadd.f32 %v3376_v59, %v3375_v56  ;;  %v3398_v62 = vpop.f32.mrb[3].mxu1  ;;  %v3931_v59 = vld [vmem:[%s4983_s10] sm:$0xff]  }
  0xfd   :  { %v3399_v63 = vadd.f32 %v3398_v62, %v3397_v58 }
  0xfe   :  { %v708_v0 = vadd.f32 %v3396_v57, %v667_v60  ;;  %v670_v1 = vadd.f32 %v3377_v61, %v3161_v52  ;;  %v1840_v60 = vld [vmem:[%s4986_s13] sm:$0xff]  ;;  %v1841_v61 = vld [vmem:[%s4986_s13 + $0x8] sm:$0xff] }
  0xff   :  { %v4705_v62 = vpack.c.bf16 %v1841_v61, %v1840_v60 }
 0x100   :  { %v711_v2 = vadd.f32 %v3399_v63, %v670_v1  ;;  %v4091_v63 = vmov 0.0|0.0   ;;  %v1842_v1 = vld [vmem:[%s4986_s13 + $0x10] sm:$0xff] }
 0x101   :  { %3729 = vmatprep.subr.bf16.mxu1 %v4091_v63 }
 0x118   :  { %v3416_v3 = vpop.f32.mrb[4].mxu0 }
 0x119   :  { %v3438_v4 = vpop.f32.mrb[4].mxu1  ;;  %v3417_v5 = vpop.f32.mrb[5].mxu0 }
 0x11a   :  { %v3418_v6 = vadd.f32 %v3417_v5, %v3416_v3  ;;  %v3439_v7 = vpop.f32.mrb[5].mxu1  ;;  %v3419_v8 = vpop.f32.mrb[6].mxu0 }
 0x11b   :  { %v3440_v9 = vadd.f32 %v3439_v7, %v3438_v4  ;;  %v3441_v10 = vpop.f32.mrb[6].mxu1  ;;  %v3420_v11 = vpop.f32.mrb[7].mxu0  ;;  %v3307_v4 = vld [vmem:[%s4978_s5] ss:$0 sm:$0xff] }
 0x11c   :  { %v749_v12 = vadd.f32 %v3418_v6, %v708_v0  ;;  %v3421_v13 = vadd.f32 %v3420_v11, %v3419_v8  ;;  %v3442_v14 = vpop.f32.mrb[7].mxu1  ;;  %v3932_v0 = vld [vmem:[%s4983_s10 + $0x8] sm:$0xff]  }
 0x11d   :  { %v3443_v15 = vadd.f32 %v3442_v14, %v3441_v10  ;;  %v3316_v14 = vld [vmem:[%s4982_s9] ss:$0 sm:$0xff]  ;;  %s4092_s9 = smov 64  }
 0x11e   :  { %v790_v16 = vadd.f32 %v3440_v9, %v749_v12  ;;  %v752_v17 = vadd.f32 %v3421_v13, %v711_v2  ;;  %v1843_v2 = vld [vmem:[%s4986_s13 + $0x18] sm:$0xff] }
 0x11f   :  { %v4720_v3 = vpack.c.bf16 %v1843_v2, %v1842_v1 }
 0x120   :  { %v793_v18 = vadd.f32 %v3443_v15, %v752_v17  ;;  %v796_v19 = vmax.f32 %v790_v16, 0.0 }
 0x122   :  { %v797_v20 = vmax.f32 %v793_v18, 0.0 }
 0x124   :  { %v798_v21 = vpack.c.bf16 %v797_v20, %v796_v19 }
 0x126   :  { %3610 = vmatmul.mubr.bf16.vlgmr.msra.gmra.mrb[16].mxu0 %v798_v21 }
 0x127   :  { %3637 = vmatprep.mubr.msk.bf16.mxu0 %vm4090_vm0, %v4089_v31  ;;  %3634 = vmatpush3.bf16.msra.mxu0 %v3931_v59 }
 0x128   :  { %3635 = vmatprep.subr.bf16.mxu0 %v4089_v31 }
 0x12b   :  { %3636 = vmatpush3.bf16.msra.mxu0 %v3932_v0 }
 0x12c   :  { %3735 = vmatprep.subr.bf16.mxu0 %v4091_v63 }
 0x138   :  { %v3460_v22 = vpop.f32.mrb[8].mxu0 }
 0x139   :  { %v3461_v24 = vpop.f32.mrb[9].mxu0  ;;  %v3482_v27 = vpop.f32.mrb[8].mxu1 }
 0x13a   :  { %v3462_v25 = vadd.f32 %v3461_v24, %v3460_v22  ;;  %v3463_v26 = vpop.f32.mrb[10].mxu0  ;;  %v3483_v29 = vpop.f32.mrb[9].mxu1 }
 0x13b   :  { %v3464_v28 = vpop.f32.mrb[11].mxu0  ;;  %v3484_v33 = vadd.f32 %v3483_v29, %v3482_v27  ;;  %v3485_v34 = vpop.f32.mrb[10].mxu1  ;;  %v3325_v27 = vld [vmem:[%s4984_s11] ss:$0 sm:$0xff]  ;;  %s4093_s11 = smov 32  }
 0x13c   :  { %v1393_v30 = vadd.f32 %v3462_v25, %v3234_v23  ;;  %v3465_v32 = vadd.f32 %v3464_v28, %v3463_v26  ;;  %v3486_v35 = vpop.f32.mrb[11].mxu1 }
 0x13d   :  { %v3487_v38 = vadd.f32 %v3486_v35, %v3485_v34 }
 0x13e   :  { %v1396_v36 = vadd.f32 %v3465_v32, %v3234_v23  ;;  %v1434_v37 = vadd.f32 %v3484_v33, %v1393_v30 }
 0x140   :  { %v1437_v39 = vadd.f32 %v3487_v38, %v1396_v36 }
 0x158   :  { %v3504_v40 = vpop.f32.mrb[12].mxu0 }
 0x159   :  { %v3505_v41 = vpop.f32.mrb[13].mxu0  ;;  %v3526_v44 = vpop.f32.mrb[12].mxu1 }
 0x15a   :  { %v3506_v42 = vadd.f32 %v3505_v41, %v3504_v40  ;;  %v3507_v43 = vpop.f32.mrb[14].mxu0  ;;  %v3527_v46 = vpop.f32.mrb[13].mxu1 }
 0x15b   :  { %v3508_v45 = vpop.f32.mrb[15].mxu0  ;;  %v3528_v49 = vadd.f32 %v3527_v46, %v3526_v44  ;;  %v3529_v50 = vpop.f32.mrb[14].mxu1 }
 0x15c   :  { %v1475_v47 = vadd.f32 %v3506_v42, %v1434_v37  ;;  %v3509_v48 = vadd.f32 %v3508_v45, %v3507_v43  ;;  %v3530_v51 = vpop.f32.mrb[15].mxu1 }
 0x15d   :  { %v3531_v54 = vadd.f32 %v3530_v51, %v3529_v50 }
 0x15e   :  { %v1478_v52 = vadd.f32 %v3509_v48, %v1437_v39  ;;  %v1516_v53 = vadd.f32 %v3528_v49, %v1475_v47 }
 0x160   :  { %v1522_v55 = vmax.f32 %v1516_v53, 0.0  ;;  %v1519_v56 = vadd.f32 %v3531_v54, %v1478_v52 }
 0x162   :  { %v1523_v57 = vmax.f32 %v1519_v56, 0.0 }
 0x164   :  { %v1524_v58 = vpack.c.bf16 %v1523_v57, %v1522_v55 }
 0x166   :  { %3630 = vmatmul.mubr.bf16.vlgmr.msra.gmra.mrb[16].mxu1 %v1524_v58 }
 0x167   :  { %3649 = vmatprep.mubr.msk.f32.mxu1 %vm4090_vm0, %v4089_v31  ;;  %3731 = vmatpush3.bf16.msra.mxu1 %v4705_v62 }
 0x168   :  { %3732 = vmatprep.subr.bf16.mxu1 %v4091_v63 }
 0x16b   :  { %3734 = vmatpush3.bf16.msra.mxu1 %v4720_v3 }
 0x16c   :  { %3741 = vmatprep.subr.bf16.mxu1 %v4091_v63 }
 0x16e   :  { %3650 = vmatmul.mubr.f32.vlgmr.msra.gmra.mrb[20].mxu1 %v4089_v31 }
 0x16f   :  { %3743 = vmatpush3.bf16.msra.mxu1 %v4705_v62  ;;  %3671 = vmatprep.mubr.msk.f32.mxu1 %vm4090_vm0, %v4089_v31 }
 0x170   :  { %3744 = vmatprep.subr.bf16.mxu1 %v4091_v63 }
 0x173   :  { %3746 = vmatpush3.bf16.msra.mxu1 %v4720_v3 }
 0x174   :  { %3753 = vmatprep.subr.bf16.mxu1 %v4091_v63 }
 0x1f9   :  { %v1630_v5 = vpop.f32.mrb[16].mxu0 }
 0x1fa   :  { %v1631_v6 = vadd.f32 %v3307_v4, %v1630_v5  ;;  %v3611_v7 = vpop.f32.mrb[17].mxu0 }
 0x1fb   :  { %v1633_v8 = vpop.f32.mrb[18].mxu0 }
 0x1fc   :  { %v1634_v9 = vadd.f32 %v3307_v4, %v1633_v8  ;;  %v3612_v10 = vpop.f32.mrb[19].mxu0  ;;  %v1637_v11 = vmax.f32 %v1631_v6, 0.0 }
 0x1fe   :  { %v1638_v12 = vmax.f32 %v1634_v9, 0.0 }
 0x200   :  { %v1639_v13 = vpack.c.bf16 %v1638_v12, %v1637_v11 }
 0x202   :  { %3638 = vmatmul.mubr.msk.bf16.vlgmr.msra.gmra.mrb[20].mxu0 %vm1778_vm1, %v1639_v13 }
 0x203   :  { %3737 = vmatpush3.bf16.msra.mxu0 %v4705_v62  ;;  %3660 = vmatprep.mubr.msk.f32.mxu0 %vm4090_vm0, %v4089_v31 }
 0x204   :  { %3738 = vmatprep.subr.bf16.mxu0 %v4091_v63 }
 0x207   :  { %3740 = vmatpush3.bf16.msra.mxu0 %v4720_v3 }
 0x208   :  { %3747 = vmatprep.subr.bf16.mxu0 %v4091_v63 }
 0x239   :  { %v1745_v15 = vpop.f32.mrb[16].mxu1 }
 0x23a   :  { %v1746_v16 = vadd.f32 %v3316_v14, %v1745_v15  ;;  %v3631_v17 = vpop.f32.mrb[17].mxu1 }
 0x23b   :  { %v1748_v18 = vpop.f32.mrb[18].mxu1 }
 0x23c   :  { %v1752_v19 = vmax.f32 %v1746_v16, 0.0  ;;  %v1749_v20 = vadd.f32 %v3316_v14, %v1748_v18  ;;  %v3632_v21 = vpop.f32.mrb[19].mxu1 }
 0x23e   :  { %v1753_v22 = vmax.f32 %v1749_v20, 0.0 }
 0x240   :  { %v4745_v23 = vpack.c.bf16 %v1753_v22, %v1752_v19 }
 0x241   :  { %v1914_v24 = vpop.f32.mrb[20].mxu1 }
 0x242   :  { %v3651_v25 = vpop.f32.mrb[21].mxu1  ;;  %v1919_v29 = vrot.slane %v1914_v24, 1 }
 0x2d5   :  { %v1816_v26 = vpop.f32.mrb[20].mxu0 }
 0x2d6   :  { %v3639_v28 = vpop.f32.mrb[21].mxu0  ;;  %v4752_v34 = vadd.f32 %v3325_v27, %v1816_v26 }
 0x2d7   :  { %v1819_v30 = vpop.f32.mrb[22].mxu0 }
 0x2d8   :  { %v4750_v32 = vadd.f32 %v3325_v27, %v1819_v30  ;;  %v3640_v33 = vpop.f32.mrb[23].mxu0  ;;  %v1922_v36 = vadd.f32 %v1914_v24, %v4752_v34 }
 0x2da   :  { %v1923_v35 = vadd.f32 %v1919_v29, %v4750_v32  ;;  %v3330_v40 = vmul.f32 -1.442695, %v1922_v36 }
 0x2dc   :  { %3933 = vtanh.f32 %v1923_v35  ;;  %v3331_v39 = vmul.f32 -1.442695, %v1923_v35 }
 0x2dd   :  { %3935 = vtanh.f32 %v1922_v36 }
 0x2de   :  { %3937 = vpow2.f32 %v3331_v39 }
 0x2df   :  { %3939 = vpow2.f32 %v3330_v40 }
 0x2e6   :  { %v3934_v37 = vpop.eup %3933 }
 0x2e7   :  { %1944 = vrot.lane.b32.xlu0 %v3934_v37, %s4092_s9  ;;  %v3936_v38 = vpop.eup %3935 }
 0x2e8   :  { %v3938_v41 = vpop.eup %3937 }
 0x2e9   :  { %v1931_v42 = vadd.f32 1.0, %v3938_v41  ;;  %v3940_v43 = vpop.eup %3939 }
 0x2ea   :  { %v1930_v44 = vadd.f32 1.0, %v3940_v43 }
 0x2eb   :  { %1942 = vrot.lane.b32.xlu0 %v3936_v38, %s4092_s9  ;;  %3941 = vrcp.f32 %v1931_v42 }
 0x2ec   :  { %3943 = vrcp.f32 %v1930_v44 }
 0x2f5   :  { %v3942_v45 = vpop.eup %3941 }
 0x2f6   :  { %v3944_v48 = vpop.eup %3943  ;;  %v1939_v51 = vmul.f32 0.0, %v3942_v45 }
 0x2f7   :  { %v1938_v54 = vmul.f32 0.0, %v3944_v48 }
 0x359   :  { %v1945_v46 = vpop.permute.xlu0 %1944 }
 0x35a   :  { %v1949_v47 = vmul.f32 %v3942_v45, %v1945_v46 }
 0x35c   :  { %1954 = vrot.lane.b32.xlu1 %v1949_v47, %s4093_s11 }
 0x35d   :  { %v1943_v49 = vpop.permute.xlu0 %1942 }
 0x35e   :  { %v1948_v50 = vmul.f32 %v3944_v48, %v1943_v49 }
 0x360   :  { %1952 = vrot.lane.b32.xlu1 %v1948_v50, %s4093_s11 }
 0x3ce   :  { %v1955_v52 = vpop.permute.xlu1 %1954 }
 0x3cf   :  { %v1959_v53 = vadd.f32 %v1955_v52, %v1939_v51 }
 0x3d1   :  { %3945 = vtanh.f32 %v1959_v53  ;;  %v2095_v25 = vrot.slane %v1959_v53, 7 }
 0x3d2   :  { %v1953_v55 = vpop.permute.xlu1 %1952 }
 0x3d3   :  { %v1958_v56 = vadd.f32 %v1953_v55, %v1938_v54 }
 0x3d5   :  { %3947 = vtanh.f32 %v1958_v56  ;;  %v2094_v27 = vrot.slane %v1958_v56, 7 }
 0x3db   :  { %v3946_v57 = vpop.eup %3945 }
 0x3dc   :  { %1966 = vrot.lane.b32.xlu0 %v3946_v57, %s4092_s9 }
 0x3df   :  { %v3948_v58 = vpop.eup %3947 }
 0x3e0   :  { %1964 = vrot.lane.b32.xlu1 %v3948_v58, %s4092_s9 }
 0x44e   :  { %v1967_v59 = vpop.permute.xlu0 %1966 }
 0x44f   :  { %v4762_v60 = vmul.f32 %v3942_v45, %v1967_v59 }
 0x451   :  { %v1996_v0 = vrot.slane %v4762_v60, 7 }
 0x452   :  { %v1965_v61 = vpop.permute.xlu1 %1964 }
 0x453   :  { %v4765_v1 = vmul.f32 %v3944_v48, %v1965_v61 }
 0x455   :  { %v1997_v2 = vsel %vm1985_vm2, %v1996_v0, %v4765_v1 }
 0x456   :  { %1998 = vrot.lane.b32.xlu0 %v1997_v2, %s4093_s11 }
 0x4c8   :  { %v1999_v4 = vpop.permute.xlu0 %1998 }
 0x4c9   :  { %3661 = vmatmul.mubr.msk.f32.vlgmr.msra.gmra.mrb[24].mxu0 %vm1778_vm1, %v1999_v4 }
 0x4ca   :  { %3749 = vmatpush3.bf16.msra.mxu0 %v4705_v62  ;;  %3682 = vmatprep.mubr.msk.f32.mxu0 %vm4090_vm0, %v4089_v31 }
 0x4cb   :  { %3750 = vmatprep.subr.bf16.mxu0 %v4091_v63 }
 0x4ce   :  { %3752 = vmatpush3.bf16.msra.mxu0 %v4720_v3 }
 0x4cf   :  { %3759 = vmatprep.subr.bf16.mxu0 %v4091_v63 }
 0x59c   :  { %v2068_v5 = vpop.f32.mrb[24].mxu0 }
 0x59d   :  { %v2073_v6 = vrot.slane %v2068_v5, 7  ;;  %v2077_v7 = vadd.f32 %v2068_v5, %v4750_v32  ;;  %v3662_v8 = vpop.f32.mrb[25].mxu0 }
 0x59f   :  { %v2076_v9 = vadd.f32 %v2073_v6, %v4752_v34  ;;  %3949 = vtanh.f32 %v2077_v7  ;;  %v3335_v12 = vmul.f32 -1.442695, %v2077_v7 }
 0x5a1   :  { %3951 = vtanh.f32 %v2076_v9  ;;  %v3334_v13 = vmul.f32 -1.442695, %v2076_v9 }
 0x5a2   :  { %3953 = vpow2.f32 %v3335_v12 }
 0x5a3   :  { %3955 = vpow2.f32 %v3334_v13 }
 0x5a9   :  { %v3950_v10 = vpop.eup %3949 }
 0x5aa   :  { %2104 = vrot.lane.b32.xlu0 %v3950_v10, %s4092_s9 }
 0x5ab   :  { %v3952_v11 = vpop.eup %3951 }
 0x5ac   :  { %2102 = vrot.lane.b32.xlu1 %v3952_v11, %s4092_s9  ;;  %v3954_v14 = vpop.eup %3953 }
 0x5ad   :  { %v3956_v15 = vpop.eup %3955  ;;  %v2085_v16 = vadd.f32 1.0, %v3954_v14 }
 0x5ae   :  { %v2084_v17 = vadd.f32 1.0, %v3956_v15 }
 0x5af   :  { %3957 = vrcp.f32 %v2085_v16 }
 0x5b0   :  { %3959 = vrcp.f32 %v2084_v17 }
 0x5b9   :  { %v3958_v18 = vpop.eup %3957 }
 0x5ba   :  { %v3960_v21 = vpop.eup %3959  ;;  %v2099_v26 = vmul.f32 %v3958_v18, %v2095_v25 }
 0x5bb   :  { %v2098_v30 = vmul.f32 %v3960_v21, %v2094_v27 }
 0x61c   :  { %v2105_v19 = vpop.permute.xlu0 %2104 }
 0x61d   :  { %v2109_v20 = vmul.f32 %v3958_v18, %v2105_v19 }
 0x61e   :  { %v2103_v22 = vpop.permute.xlu1 %2102 }
 0x61f   :  { %2114 = vrot.lane.b32.xlu0 %v2109_v20, %s4093_s11  ;;  %v2108_v24 = vmul.f32 %v3960_v21, %v2103_v22 }
 0x621   :  { %2112 = vrot.lane.b32.xlu1 %v2108_v24, %s4093_s11 }
 0x691   :  { %v2115_v28 = vpop.permute.xlu0 %2114 }
 0x692   :  { %v2119_v29 = vadd.f32 %v2115_v28, %v2099_v26 }
 0x693   :  { %v2113_v33 = vpop.permute.xlu1 %2112 }
 0x694   :  { %3961 = vtanh.f32 %v2119_v29  ;;  %v2118_v35 = vadd.f32 %v2113_v33, %v2098_v30  ;;  %v2248_v7 = vrot.slane %v2119_v29, 7 }
 0x696   :  { %3963 = vtanh.f32 %v2118_v35  ;;  %v2247_v6 = vrot.slane %v2118_v35, 7 }
 0x69e   :  { %v3962_v36 = vpop.eup %3961 }
 0x69f   :  { %2126 = vrot.lane.b32.xlu0 %v3962_v36, %s4092_s9 }
 0x6a0   :  { %v3964_v37 = vpop.eup %3963 }
 0x6a1   :  { %2124 = vrot.lane.b32.xlu1 %v3964_v37, %s4092_s9 }
 0x711   :  { %v2127_v38 = vpop.permute.xlu0 %2126 }
 0x712   :  { %v4787_v41 = vmul.f32 %v3958_v18, %v2127_v38 }
 0x713   :  { %v2125_v39 = vpop.permute.xlu1 %2124 }
 0x714   :  { %v4785_v40 = vmul.f32 %v3960_v21, %v2125_v39 }
 0x716   :  { %v2148_v42 = vrot.slane %v4785_v40, 1 }
 0x718   :  { %v2149_v43 = vsel %vm1985_vm2, %v4787_v41, %v2148_v42 }
 0x719   :  { %2150 = vrot.lane.b32.xlu1 %v2149_v43, %s4093_s11 }
 0x78b   :  { %v2151_v44 = vpop.permute.xlu1 %2150 }
 0x78c   :  { %3672 = vmatmul.mubr.msk.f32.vlgmr.msra.gmra.mrb[22].mxu1 %vm1778_vm1, %v2151_v44 }
 0x78d   :  { %3755 = vmatpush3.bf16.msra.mxu1 %v4705_v62  ;;  %3693 = vmatprep.mubr.msk.f32.mxu1 %vm4090_vm0, %v4089_v31 }
 0x78e   :  { %3756 = vmatprep.subr.bf16.mxu1 %v4091_v63 }
 0x791   :  { %3758 = vmatpush3.bf16.msra.mxu1 %v4720_v3 }
 0x792   :  { %3765 = vmatprep.subr.bf16.mxu1 %v4091_v63 }
 0x85f   :  { %v2220_v45 = vpop.f32.mrb[22].mxu1 }
 0x860   :  { %v2225_v46 = vrot.slane %v2220_v45, 6  ;;  %v2226_v47 = vrot.slane %v2220_v45, 7  ;;  %v3673_v48 = vpop.f32.mrb[23].mxu1 }
 0x862   :  { %v2229_v49 = vadd.f32 %v2225_v46, %v4752_v34  ;;  %v2230_v50 = vadd.f32 %v2226_v47, %v4750_v32 }
 0x864   :  { %3965 = vtanh.f32 %v2229_v49  ;;  %v3337_v53 = vmul.f32 -1.442695, %v2229_v49  ;;  %v3338_v54 = vmul.f32 -1.442695, %v2230_v50 }
 0x865   :  { %3967 = vtanh.f32 %v2230_v50 }
 0x866   :  { %3969 = vpow2.f32 %v3337_v53 }
 0x867   :  { %3971 = vpow2.f32 %v3338_v54 }
 0x86e   :  { %v3966_v51 = vpop.eup %3965 }
 0x86f   :  { %v3968_v52 = vpop.eup %3967  ;;  %2255 = vrot.lane.b32.xlu0 %v3966_v51, %s4092_s9 }
 0x870   :  { %2257 = vrot.lane.b32.xlu1 %v3968_v52, %s4092_s9  ;;  %v3970_v55 = vpop.eup %3969 }
 0x871   :  { %v3972_v56 = vpop.eup %3971  ;;  %v2237_v57 = vadd.f32 1.0, %v3970_v55 }
 0x872   :  { %v2238_v58 = vadd.f32 1.0, %v3972_v56 }
 0x873   :  { %3973 = vrcp.f32 %v2237_v57 }
 0x874   :  { %3975 = vrcp.f32 %v2238_v58 }
 0x87d   :  { %v3974_v59 = vpop.eup %3973 }
 0x87e   :  { %v3976_v0 = vpop.eup %3975  ;;  %v2251_v8 = vmul.f32 %v3974_v59, %v2247_v6 }
 0x87f   :  { %v2252_v9 = vmul.f32 %v3976_v0, %v2248_v7 }
 0x8e1   :  { %v2256_v61 = vpop.permute.xlu0 %2255 }
 0x8e2   :  { %v2258_v2 = vpop.permute.xlu1 %2257  ;;  %v2261_v4 = vmul.f32 %v3974_v59, %v2256_v61 }
 0x8e3   :  { %v2262_v5 = vmul.f32 %v3976_v0, %v2258_v2 }
 0x8e4   :  { %2265 = vrot.lane.b32.xlu0 %v2261_v4, %s4093_s11 }
 0x8e5   :  { %2267 = vrot.lane.b32.xlu1 %v2262_v5, %s4093_s11 }
 0x956   :  { %v2266_v10 = vpop.permute.xlu0 %2265 }
 0x957   :  { %v2268_v11 = vpop.permute.xlu1 %2267  ;;  %v2271_v12 = vadd.f32 %v2266_v10, %v2251_v8 }
 0x958   :  { %v2272_v13 = vadd.f32 %v2268_v11, %v2252_v9 }
 0x959   :  { %3977 = vtanh.f32 %v2271_v12  ;;  %v2401_v50 = vrot.slane %v2271_v12, 7 }
 0x95a   :  { %3979 = vtanh.f32 %v2272_v13  ;;  %v2402_v51 = vrot.slane %v2272_v13, 7 }
 0x963   :  { %v3978_v14 = vpop.eup %3977 }
 0x964   :  { %v3980_v15 = vpop.eup %3979  ;;  %2277 = vrot.lane.b32.xlu0 %v3978_v14, %s4092_s9 }
 0x965   :  { %2279 = vrot.lane.b32.xlu1 %v3980_v15, %s4092_s9 }
 0x9d6   :  { %v2278_v16 = vpop.permute.xlu0 %2277 }
 0x9d7   :  { %v2280_v17 = vpop.permute.xlu1 %2279  ;;  %v4808_v18 = vmul.f32 %v3974_v59, %v2278_v16 }
 0x9d8   :  { %v4810_v19 = vmul.f32 %v3976_v0, %v2280_v17 }
 0x9d9   :  { %v2301_v20 = vrot.slane %v4808_v18, 2 }
 0x9da   :  { %v2302_v21 = vrot.slane %v4810_v19, 1 }
 0x9dc   :  { %v2303_v22 = vsel %vm1985_vm2, %v2302_v21, %v2301_v20 }
 0x9dd   :  { %2304 = vrot.lane.b32.xlu0 %v2303_v22, %s4093_s11 }
 0xa4f   :  { %v2305_v24 = vpop.permute.xlu0 %2304 }
 0xa50   :  { %3683 = vmatmul.mubr.msk.f32.vlgmr.msra.gmra.mrb[26].mxu0 %vm1778_vm1, %v2305_v24 }
 0xa51   :  { %3761 = vmatpush3.bf16.msra.mxu0 %v4705_v62  ;;  %3704 = vmatprep.mubr.msk.f32.mxu0 %vm4090_vm0, %v4089_v31 }
 0xa52   :  { %3762 = vmatprep.subr.bf16.mxu0 %v4091_v63 }
 0xa55   :  { %3764 = vmatpush3.bf16.msra.mxu0 %v4720_v3 }
 0xa56   :  { %3771 = vmatprep.subr.bf16.mxu0 %v4091_v63 }
 0xb23   :  { %v2374_v25 = vpop.f32.mrb[26].mxu0 }
 0xb24   :  { %v2379_v26 = vrot.slane %v2374_v25, 5  ;;  %v2380_v27 = vrot.slane %v2374_v25, 6  ;;  %v3684_v28 = vpop.f32.mrb[27].mxu0 }
 0xb26   :  { %v2383_v29 = vadd.f32 %v2379_v26, %v4752_v34  ;;  %v2384_v30 = vadd.f32 %v2380_v27, %v4750_v32 }
 0xb28   :  { %3981 = vtanh.f32 %v2383_v29  ;;  %v3340_v36 = vmul.f32 -1.442695, %v2383_v29  ;;  %v3341_v37 = vmul.f32 -1.442695, %v2384_v30 }
 0xb29   :  { %3983 = vtanh.f32 %v2384_v30 }
 0xb2a   :  { %3985 = vpow2.f32 %v3340_v36 }
 0xb2b   :  { %3987 = vpow2.f32 %v3341_v37 }
 0xb32   :  { %v3982_v33 = vpop.eup %3981 }
 0xb33   :  { %v3984_v35 = vpop.eup %3983  ;;  %2409 = vrot.lane.b32.xlu1 %v3982_v33, %s4092_s9 }
 0xb34   :  { %2411 = vrot.lane.b32.xlu0 %v3984_v35, %s4092_s9  ;;  %v3986_v38 = vpop.eup %3985 }
 0xb35   :  { %v3988_v39 = vpop.eup %3987  ;;  %v2391_v42 = vadd.f32 1.0, %v3986_v38 }
 0xb36   :  { %v2392_v43 = vadd.f32 1.0, %v3988_v39 }
 0xb37   :  { %3989 = vrcp.f32 %v2391_v42 }
 0xb38   :  { %3991 = vrcp.f32 %v2392_v43 }
 0xb41   :  { %v3990_v44 = vpop.eup %3989 }
 0xb42   :  { %v3992_v46 = vpop.eup %3991  ;;  %v2405_v52 = vmul.f32 %v3990_v44, %v2401_v50 }
 0xb43   :  { %v2406_v53 = vmul.f32 %v3992_v46, %v2402_v51 }
 0xba5   :  { %v2410_v45 = vpop.permute.xlu1 %2409 }
 0xba6   :  { %v2412_v47 = vpop.permute.xlu0 %2411  ;;  %v2415_v48 = vmul.f32 %v3990_v44, %v2410_v45 }
 0xba7   :  { %v2416_v49 = vmul.f32 %v3992_v46, %v2412_v47 }
 0xba8   :  { %2419 = vrot.lane.b32.xlu1 %v2415_v48, %s4093_s11 }
 0xba9   :  { %2421 = vrot.lane.b32.xlu0 %v2416_v49, %s4093_s11 }
 0xc1a   :  { %v2420_v54 = vpop.permute.xlu1 %2419 }
 0xc1b   :  { %v2422_v55 = vpop.permute.xlu0 %2421  ;;  %v2425_v56 = vadd.f32 %v2420_v54, %v2405_v52 }
 0xc1c   :  { %v2426_v57 = vadd.f32 %v2422_v55, %v2406_v53 }
 0xc1d   :  { %3993 = vtanh.f32 %v2425_v56  ;;  %v2555_v35 = vrot.slane %v2425_v56, 7 }
 0xc1e   :  { %3995 = vtanh.f32 %v2426_v57  ;;  %v2556_v36 = vrot.slane %v2426_v57, 7 }
 0xc27   :  { %v3994_v58 = vpop.eup %3993 }
 0xc28   :  { %v3996_v59 = vpop.eup %3995  ;;  %2431 = vrot.lane.b32.xlu1 %v3994_v58, %s4092_s9 }
 0xc29   :  { %2433 = vrot.lane.b32.xlu0 %v3996_v59, %s4092_s9 }
 0xc9a   :  { %v2432_v61 = vpop.permute.xlu1 %2431 }
 0xc9b   :  { %v2434_v0 = vpop.permute.xlu0 %2433  ;;  %v4831_v2 = vmul.f32 %v3990_v44, %v2432_v61 }
 0xc9c   :  { %v4833_v4 = vmul.f32 %v3992_v46, %v2434_v0 }
 0xc9d   :  { %v2455_v5 = vrot.slane %v4831_v2, 3 }
 0xc9e   :  { %v2456_v6 = vrot.slane %v4833_v4, 2 }
 0xca0   :  { %v2457_v7 = vsel %vm1985_vm2, %v2456_v6, %v2455_v5 }
 0xca1   :  { %2458 = vrot.lane.b32.xlu1 %v2457_v7, %s4093_s11 }
 0xd13   :  { %v2459_v8 = vpop.permute.xlu1 %2458 }
 0xd14   :  { %3694 = vmatmul.mubr.msk.f32.vlgmr.msra.gmra.mrb[24].mxu1 %vm1778_vm1, %v2459_v8 }
 0xd15   :  { %3767 = vmatpush3.bf16.msra.mxu1 %v4705_v62  ;;  %3715 = vmatprep.mubr.msk.f32.mxu1 %vm4090_vm0, %v4089_v31 }
 0xd16   :  { %3768 = vmatprep.subr.bf16.mxu1 %v4091_v63 }
 0xd19   :  { %3770 = vmatpush3.bf16.msra.mxu1 %v4720_v3 }
 0xde7   :  { %v2528_v9 = vpop.f32.mrb[24].mxu1 }
 0xde8   :  { %v2533_v10 = vrot.slane %v2528_v9, 4  ;;  %v2534_v11 = vrot.slane %v2528_v9, 5  ;;  %v3695_v12 = vpop.f32.mrb[25].mxu1 }
 0xdea   :  { %v2537_v13 = vadd.f32 %v2533_v10, %v4752_v34  ;;  %v2538_v14 = vadd.f32 %v2534_v11, %v4750_v32 }
 0xdec   :  { %3997 = vtanh.f32 %v2537_v13  ;;  %v3343_v17 = vmul.f32 -1.442695, %v2537_v13  ;;  %v3344_v20 = vmul.f32 -1.442695, %v2538_v14 }
 0xded   :  { %3999 = vtanh.f32 %v2538_v14 }
 0xdee   :  { %4001 = vpow2.f32 %v3343_v17 }
 0xdef   :  { %4003 = vpow2.f32 %v3344_v20 }
 0xdf6   :  { %v3998_v15 = vpop.eup %3997 }
 0xdf7   :  { %v4000_v16 = vpop.eup %3999  ;;  %2563 = vrot.lane.b32.xlu0 %v3998_v15, %s4092_s9 }
 0xdf8   :  { %2565 = vrot.lane.b32.xlu1 %v4000_v16, %s4092_s9  ;;  %v4002_v21 = vpop.eup %4001 }
 0xdf9   :  { %v4004_v22 = vpop.eup %4003  ;;  %v2545_v24 = vadd.f32 1.0, %v4002_v21 }
 0xdfa   :  { %v2546_v25 = vadd.f32 1.0, %v4004_v22 }
 0xdfb   :  { %4005 = vrcp.f32 %v2545_v24 }
 0xdfc   :  { %4007 = vrcp.f32 %v2546_v25 }
 0xe05   :  { %v4006_v26 = vpop.eup %4005 }
 0xe06   :  { %v4008_v28 = vpop.eup %4007  ;;  %v2559_v37 = vmul.f32 %v4006_v26, %v2555_v35 }
 0xe07   :  { %v2560_v38 = vmul.f32 %v4008_v28, %v2556_v36 }
 0xe69   :  { %v2564_v27 = vpop.permute.xlu0 %2563 }
 0xe6a   :  { %v2566_v29 = vpop.permute.xlu1 %2565  ;;  %v2569_v30 = vmul.f32 %v4006_v26, %v2564_v27 }
 0xe6b   :  { %v2570_v33 = vmul.f32 %v4008_v28, %v2566_v29 }
 0xe6c   :  { %2573 = vrot.lane.b32.xlu0 %v2569_v30, %s4093_s11 }
 0xe6d   :  { %2575 = vrot.lane.b32.xlu1 %v2570_v33, %s4093_s11 }
 0xede   :  { %v2574_v39 = vpop.permute.xlu0 %2573 }
 0xedf   :  { %v2576_v42 = vpop.permute.xlu1 %2575  ;;  %v2579_v43 = vadd.f32 %v2574_v39, %v2559_v37 }
 0xee0   :  { %v2580_v44 = vadd.f32 %v2576_v42, %v2560_v38 }
 0xee1   :  { %4009 = vtanh.f32 %v2579_v43  ;;  %v2709_v14 = vrot.slane %v2579_v43, 7 }
 0xee2   :  { %4011 = vtanh.f32 %v2580_v44  ;;  %v2710_v15 = vrot.slane %v2580_v44, 7 }
 0xeeb   :  { %v4010_v45 = vpop.eup %4009 }
 0xeec   :  { %v4012_v46 = vpop.eup %4011  ;;  %2585 = vrot.lane.b32.xlu0 %v4010_v45, %s4092_s9 }
 0xeed   :  { %2587 = vrot.lane.b32.xlu1 %v4012_v46, %s4092_s9 }
 0xf5e   :  { %v2586_v47 = vpop.permute.xlu0 %2585 }
 0xf5f   :  { %v2588_v48 = vpop.permute.xlu1 %2587  ;;  %v4853_v49 = vmul.f32 %v4006_v26, %v2586_v47 }
 0xf60   :  { %v4855_v50 = vmul.f32 %v4008_v28, %v2588_v48 }
 0xf61   :  { %v2609_v51 = vrot.slane %v4853_v49, 4 }
 0xf62   :  { %v2610_v52 = vrot.slane %v4855_v50, 3 }
 0xf64   :  { %v2611_v53 = vsel %vm1985_vm2, %v2610_v52, %v2609_v51 }
 0xf65   :  { %2612 = vrot.lane.b32.xlu0 %v2611_v53, %s4093_s11 }
 0xfd7   :  { %v2613_v54 = vpop.permute.xlu0 %2612 }
 0xfd8   :  { %3705 = vmatmul.mubr.msk.f32.vlgmr.msra.gmra.mrb[28].mxu0 %vm1778_vm1, %v2613_v54 }
 0xfd9   :  { %3773 = vmatpush3.bf16.msra.mxu0 %v4705_v62  ;;  %3726 = vmatprep.mubr.msk.f32.mxu0 %vm4090_vm0, %v4089_v31  ;;  %vm2911_vm0 = vcmask 261126  }
 0xfda   :  { %3774 = vmatprep.subr.bf16.mxu0 %v4091_v63 }
 0xfdd   :  { %3776 = vmatpush3.bf16.msra.mxu0 %v4720_v3 }
0x10ab   :  { %v2682_v55 = vpop.f32.mrb[28].mxu0 }
0x10ac   :  { %v2687_v56 = vrot.slane %v2682_v55, 3  ;;  %v2688_v57 = vrot.slane %v2682_v55, 4  ;;  %v3706_v58 = vpop.f32.mrb[29].mxu0 }
0x10ae   :  { %v2691_v59 = vadd.f32 %v2687_v56, %v4752_v34  ;;  %v2692_v61 = vadd.f32 %v2688_v57, %v4750_v32 }
0x10b0   :  { %4013 = vtanh.f32 %v2691_v59  ;;  %v3346_v31 = vmul.f32 -1.442695, %v2691_v59  ;;  %v3347_v62 = vmul.f32 -1.442695, %v2692_v61 }
0x10b1   :  { %4015 = vtanh.f32 %v2692_v61 }
0x10b2   :  { %4017 = vpow2.f32 %v3346_v31 }
0x10b3   :  { %4019 = vpow2.f32 %v3347_v62 }
0x10ba   :  { %v4014_v0 = vpop.eup %4013 }
0x10bb   :  { %v4016_v5 = vpop.eup %4015  ;;  %2717 = vrot.lane.b32.xlu1 %v4014_v0, %s4092_s9 }
0x10bc   :  { %2719 = vrot.lane.b32.xlu0 %v4016_v5, %s4092_s9  ;;  %v4018_v63 = vpop.eup %4017 }
0x10bd   :  { %v4020_v3 = vpop.eup %4019  ;;  %v2699_v6 = vadd.f32 1.0, %v4018_v63 }
0x10be   :  { %v2700_v7 = vadd.f32 1.0, %v4020_v3 }
0x10bf   :  { %4021 = vrcp.f32 %v2699_v6 }
0x10c0   :  { %4023 = vrcp.f32 %v2700_v7 }
0x10c9   :  { %v4022_v8 = vpop.eup %4021 }
0x10ca   :  { %v4024_v10 = vpop.eup %4023  ;;  %v2713_v16 = vmul.f32 %v4022_v8, %v2709_v14 }
0x10cb   :  { %v2714_v17 = vmul.f32 %v4024_v10, %v2710_v15 }
0x112d   :  { %v2718_v9 = vpop.permute.xlu1 %2717 }
0x112e   :  { %v2720_v11 = vpop.permute.xlu0 %2719  ;;  %v2723_v12 = vmul.f32 %v4022_v8, %v2718_v9 }
0x112f   :  { %v2724_v13 = vmul.f32 %v4024_v10, %v2720_v11 }
0x1130   :  { %2727 = vrot.lane.b32.xlu1 %v2723_v12, %s4093_s11 }
0x1131   :  { %2729 = vrot.lane.b32.xlu0 %v2724_v13, %s4093_s11 }
0x11a2   :  { %v2728_v20 = vpop.permute.xlu1 %2727 }
0x11a3   :  { %v2730_v21 = vpop.permute.xlu0 %2729  ;;  %v2733_v22 = vadd.f32 %v2728_v20, %v2713_v16 }
0x11a4   :  { %v2734_v24 = vadd.f32 %v2730_v21, %v2714_v17 }
0x11a5   :  { %4025 = vtanh.f32 %v2733_v22  ;;  %v2863_v5 = vrot.slane %v2733_v22, 7 }
0x11a6   :  { %4027 = vtanh.f32 %v2734_v24  ;;  %v2864_v31 = vrot.slane %v2734_v24, 7 }
0x11af   :  { %v4026_v25 = vpop.eup %4025 }
0x11b0   :  { %v4028_v26 = vpop.eup %4027  ;;  %2739 = vrot.lane.b32.xlu1 %v4026_v25, %s4092_s9 }
0x11b1   :  { %2741 = vrot.lane.b32.xlu0 %v4028_v26, %s4092_s9 }
0x1222   :  { %v2740_v27 = vpop.permute.xlu1 %2739 }
0x1223   :  { %v2742_v28 = vpop.permute.xlu0 %2741  ;;  %v4875_v29 = vmul.f32 %v4022_v8, %v2740_v27 }
0x1224   :  { %v4877_v30 = vmul.f32 %v4024_v10, %v2742_v28 }
0x1225   :  { %v2763_v33 = vrot.slane %v4875_v29, 5 }
0x1226   :  { %v2764_v35 = vrot.slane %v4877_v30, 4 }
0x1228   :  { %v2765_v36 = vsel %vm1985_vm2, %v2764_v35, %v2763_v33 }
0x1229   :  { %2766 = vrot.lane.b32.xlu1 %v2765_v36, %s4093_s11 }
0x129b   :  { %v2767_v37 = vpop.permute.xlu1 %2766 }
0x129c   :  { %3716 = vmatmul.mubr.msk.f32.vlgmr.msra.gmra.mrb[26].mxu1 %vm1778_vm1, %v2767_v37 }
0x136f   :  { %v2836_v38 = vpop.f32.mrb[26].mxu1 }
0x1370   :  { %v2841_v39 = vrot.slane %v2836_v38, 2  ;;  %v2842_v42 = vrot.slane %v2836_v38, 3  ;;  %v3717_v43 = vpop.f32.mrb[27].mxu1 }
0x1372   :  { %v2845_v44 = vadd.f32 %v2841_v39, %v4752_v34  ;;  %v2846_v45 = vadd.f32 %v2842_v42, %v4750_v32 }
0x1374   :  { %4029 = vtanh.f32 %v2845_v44  ;;  %v3349_v48 = vmul.f32 -1.442695, %v2845_v44  ;;  %v3350_v51 = vmul.f32 -1.442695, %v2846_v45 }
0x1375   :  { %4031 = vtanh.f32 %v2846_v45 }
0x1376   :  { %4033 = vpow2.f32 %v3349_v48  ;;  %v3329_v48 = vld [vmem:[%s4985_s12] ss:$0 sm:$0xff]  ;;  %s4096_s12 = smov [#allocation3]  }
0x1377   :  { %4035 = vpow2.f32 %v3350_v51 }
0x137e   :  { %v4030_v46 = vpop.eup %4029 }
0x137f   :  { %v4032_v47 = vpop.eup %4031  ;;  %2871 = vrot.lane.b32.xlu0 %v4030_v46, %s4092_s9 }
0x1380   :  { %2873 = vrot.lane.b32.xlu1 %v4032_v47, %s4092_s9  ;;  %v4034_v52 = vpop.eup %4033  ;;  %v1824_v47 = vunpack.c.h.bf16 %v4745_v23 }
0x1381   :  { %v4036_v53 = vpop.eup %4035  ;;  %v2853_v54 = vadd.f32 1.0, %v4034_v52  ;;  %v1823_v52 = vunpack.c.l.bf16 %v4745_v23 }
0x1382   :  { %v2854_v55 = vadd.f32 1.0, %v4036_v53  ;;  %v1833_v51 = vmul.f32 %v3329_v48, %v1824_v47 }
0x1383   :  { %4037 = vrcp.f32 %v2853_v54  ;;  %v1832_v54 = vmul.f32 %v3329_v48, %v1823_v52 }
0x1384   :  { %4039 = vrcp.f32 %v2854_v55  ;;  %v1837_v53 = vsel %vm1778_vm1, %v1833_v51, 0.0 }
0x1385   :  { %v1834_v55 = vsel %vm1778_vm1, %v1832_v54, 0.0 }
0x138d   :  { %v4038_v56 = vpop.eup %4037 }
0x138e   :  { %v4040_v58 = vpop.eup %4039  ;;  %v2867_v62 = vmul.f32 %v4038_v56, %v2863_v5 }
0x138f   :  { %v2868_v63 = vmul.f32 %v4040_v58, %v2864_v31 }
0x13f1   :  { %v2872_v57 = vpop.permute.xlu0 %2871 }
0x13f2   :  { %v2874_v59 = vpop.permute.xlu1 %2873  ;;  %v2877_v61 = vmul.f32 %v4038_v56, %v2872_v57 }
0x13f3   :  { %v2878_v0 = vmul.f32 %v4040_v58, %v2874_v59 }
0x13f4   :  { %2881 = vrot.lane.b32.xlu0 %v2877_v61, %s4093_s11 }
0x13f5   :  { %2883 = vrot.lane.b32.xlu1 %v2878_v0, %s4093_s11 }
0x1466   :  { %v2882_v3 = vpop.permute.xlu0 %2881 }
0x1467   :  { %v2884_v6 = vpop.permute.xlu1 %2883  ;;  %v4890_v7 = vadd.f32 %v2882_v3, %v2867_v62  ;;  %v3115_v3 = vlaneseq }
0x1468   :  { %v2888_v8 = vadd.f32 %v2884_v6, %v2868_v63 }
0x1469   :  { %4041 = vtanh.f32 %v4890_v7 }
0x146a   :  { %4043 = vtanh.f32 %v2888_v8  ;;  %v3018_v57 = vrot.slane %v2888_v8, 7  ;;  %v3116_v8 = vand.u32 127, %v3115_v3 }
0x1473   :  { %v4042_v9 = vpop.eup %4041 }
0x1474   :  { %v4044_v10 = vpop.eup %4043  ;;  %2893 = vrot.lane.b32.xlu0 %v4042_v9, %s4092_s9 }
0x1475   :  { %2895 = vrot.lane.b32.xlu1 %v4044_v10, %s4092_s9 }
0x14e6   :  { %v2894_v11 = vpop.permute.xlu0 %2893 }
0x14e7   :  { %v2896_v12 = vpop.permute.xlu1 %2895  ;;  %v4895_v13 = vmul.f32 %v4038_v56, %v2894_v11  ;;  %v3332_v56 = vld [vmem:[%s4987_s14] ss:$0 sm:$0xff]  ;;  %s3153_s14 = sshll.u32 %s4096_s12, 4  ;;  %s3154_s14 = int_to_ptr.vmem [resolvable:$true] %s3153_s14 }
0x14e8   :  { %v4897_v14 = vmul.f32 %v4040_v58, %v2896_v12  ;;  %v3017_v58 = vrot.slane %v4890_v7, 7  ;;  %v3118_v7 = vshrl.u32 %v3115_v3, 7  ;;  %s4065_s30 = scalar_lea.vmem %s3154_s14, 32  ;;  %p4070_p1 = scmp.lt.s32.totalorder %s3154_s14, %s3154_s14 }
0x14e9   :  { %v2917_v15 = vrot.slane %v4895_v13, 6  ;;  %p4066_p0 = scmp.ne.s32.totalorder %s3154_s14, %s4065_s30  ;;  %p4071_p2 = scmp.lt.s32.totalorder %s4065_s30, %s4065_s30 }
0x14ea   :  { %v2918_v16 = vrot.slane %v4897_v14, 5  ;;  %v3119_v10 = vsub.s32 %v3116_v8, %v3118_v7 }
0x14eb   :  { %p4072_p3 = por %p4071_p2, %p4070_p1 }
0x14ec   :  { %v2919_v17 = vsel %vm1985_vm2, %v2918_v16, %v2917_v15 }
0x14ed   :  { %2920 = vrot.lane.b32.xlu0 %v2919_v17, %s4093_s11  ;;  %p4073_p4 = pnand %p4072_p3, %p4066_p0 }
0x155f   :  { %v2921_v20 = vpop.permute.xlu0 %2920 }
0x1560   :  { %3727 = vmatmul.mubr.msk.f32.vlgmr.msra.gmra.mrb[30].mxu0 %vm1778_vm1, %v2921_v20  ;;  %vm3066_vm1 = vcmask 261127  }
0x1633   :  { %v2990_v21 = vpop.f32.mrb[30].mxu0 }
0x1634   :  { %v2995_v22 = vrot.slane %v2990_v21, 1  ;;  %v2996_v24 = vrot.slane %v2990_v21, 2  ;;  %v3728_v25 = vpop.f32.mrb[31].mxu0 }
0x1636   :  { %v2999_v26 = vadd.f32 %v2995_v22, %v4752_v34  ;;  %v3000_v27 = vadd.f32 %v2996_v24, %v4750_v32 }
0x1638   :  { %4045 = vtanh.f32 %v2999_v26  ;;  %v3352_v35 = vmul.f32 -1.442695, %v2999_v26  ;;  %v3353_v36 = vmul.f32 -1.442695, %v3000_v27 }
0x1639   :  { %4047 = vtanh.f32 %v3000_v27 }
0x163a   :  { %4049 = vpow2.f32 %v3352_v35 }
0x163b   :  { %4051 = vpow2.f32 %v3353_v36 }
0x1642   :  { %v4046_v28 = vpop.eup %4045 }
0x1643   :  { %v4048_v33 = vpop.eup %4047  ;;  %3025 = vrot.lane.b32.xlu0 %v4046_v28, %s4092_s9 }
0x1644   :  { %3027 = vrot.lane.b32.xlu1 %v4048_v33, %s4092_s9  ;;  %v4050_v37 = vpop.eup %4049 }
0x1645   :  { %v4052_v38 = vpop.eup %4051  ;;  %v3007_v39 = vadd.f32 1.0, %v4050_v37 }
0x1646   :  { %v3008_v42 = vadd.f32 1.0, %v4052_v38 }
0x1647   :  { %4053 = vrcp.f32 %v3007_v39 }
0x1648   :  { %4055 = vrcp.f32 %v3008_v42 }
0x1651   :  { %v4908_v34 = vpop.eup %4053 }
0x1652   :  { %v4910_v43 = vpop.eup %4055  ;;  %v3021_v5 = vmul.f32 %v4908_v34, %v3017_v58 }
0x1653   :  { %v3022_v59 = vmul.f32 %v4910_v43, %v3018_v57 }
0x16b5   :  { %v3026_v32 = vpop.permute.xlu0 %3025 }
0x16b6   :  { %v3028_v44 = vpop.permute.xlu1 %3027  ;;  %v3031_v45 = vmul.f32 %v4908_v34, %v3026_v32 }
0x16b7   :  { %v3032_v46 = vmul.f32 %v4910_v43, %v3028_v44 }
0x16b8   :  { %3035 = vrot.lane.b32.xlu0 %v3031_v45, %s4093_s11 }
0x16b9   :  { %3037 = vrot.lane.b32.xlu1 %v3032_v46, %s4093_s11 }
0x16d7   :  { %1838 = vadd.xlane.f32.xlu0 %v1837_v53 }
0x16dd   :  { %1835 = vadd.xlane.f32.xlu1 %v1834_v55 }
0x16ed   :  { %1977 = vrot.lane.b32.xlu0 %v3332_v56, %s4094_s29 }
0x172a   :  { %v3036_v23 = vpop.permute.xlu0 %3035 }
0x172b   :  { %v3038_v61 = vpop.permute.xlu1 %3037  ;;  %v3041_v31 = vadd.f32 %v3036_v23, %v3021_v5 }
0x172c   :  { %v3042_v0 = vadd.f32 %v3038_v61, %v3022_v59 }
0x172e   :  { %4057 = vtanh.f32 %v3042_v0 }
0x172f   :  { %4059 = vtanh.f32 %v3041_v31 }
0x1738   :  { %v4058_v62 = vpop.eup %4057 }
0x1739   :  { %3049 = vrot.lane.b32.xlu1 %v4058_v62, %s4092_s9  ;;  %v4060_v63 = vpop.eup %4059 }
0x173d   :  { %3047 = vrot.lane.b32.xlu1 %v4060_v63, %s4092_s9 }
0x1764   :  { %v1839_v6 = vpop.xlane.xlu0 %1838 }
0x1765   :  { %v3124_v21 = vrot.slane %v1839_v6, %v3119_v10 }
0x1768   :  { %v1978_v9 = vpop.permute.xlu0 %1977 }
0x1769   :  { %v1981_v11 = vmul.f32 %v1978_v9, %v4762_v60  ;;  %v2133_v12 = vmul.f32 %v4787_v41, %v1978_v9  ;;  %v1980_v17 = vmul.f32 %v1978_v9, %v4765_v1  ;;  %v2132_v25 = vmul.f32 %v4785_v40, %v1978_v9 }
0x176a   :  { %v1836_v15 = vpop.xlane.xlu1 %1835  ;;  %v2286_v33 = vmul.f32 %v4810_v19, %v1978_v9  ;;  %v2594_v36 = vmul.f32 %v4855_v50, %v1978_v9  ;;  %v2285_v37 = vmul.f32 %v4808_v18, %v1978_v9  ;;  %v2748_v42 = vmul.f32 %v4877_v30, %v1978_v9 }
0x176b   :  { %v3120_v16 = vrot.slane %v1836_v15, %v3119_v10  ;;  %v1984_v20 = vrot.slane %v1981_v11, 7  ;;  %v2136_v24 = vrot.slane %v2133_v12, 7  ;;  %v2440_v32 = vmul.f32 %v4833_v4, %v1978_v9 }
0x176c   :  { %v2289_v35 = vrot.slane %v2286_v33, 7  ;;  %v2597_v39 = vrot.slane %v2594_v36, 7  ;;  %v2593_v44 = vmul.f32 %v4853_v49, %v1978_v9  ;;  %v2751_v46 = vrot.slane %v2748_v42, 7 }
0x176d   :  { %v1986_v22 = vsel %vm1985_vm2, %v1984_v20, %v1980_v17  ;;  %v4938_v26 = vsel %vm1985_vm2, %v3124_v21, %v3120_v16  ;;  %v2138_v60 = vsel %vm2137_vm3, %v2136_v24, %v2132_v25  ;;  %v2443_v50 = vrot.slane %v2440_v32, 7 }
0x176e   :  { %1987 = vrot.lane.b32.xlu0 %v1986_v22, %s4093_s11  ;;  %v2291_v38 = vsel %vm2290_vm6, %v2289_v35, %v2285_v37  ;;  %v2599_v19 = vsel %vm2598_vm7, %v2597_v39, %v2593_v44  ;;  %v2902_v18 = vmul.f32 %v4897_v14, %v1978_v9  ;;  %v2747_v47 = vmul.f32 %v4875_v29, %v1978_v9 }
0x176f   :  { %v2439_v48 = vmul.f32 %v4831_v2, %v1978_v9  ;;  %v2901_v14 = vmul.f32 %v4895_v13, %v1978_v9  ;;  %vm3070_vm2 = vcmask 253952   ;;  %vm3101_vm3 = vcmask 15360  }
0x1770   :  { %v2753_v51 = vsel %vm2752_vm8, %v2751_v46, %v2747_v47  ;;  %v2905_v52 = vrot.slane %v2902_v18, 7  ;;  %vm3107_vm6 = vcmask 39936   ;;  %vm3109_vm7 = vcmask 48128  }
0x1771   :  { %v2445_v49 = vsel %vm2444_vm9, %v2443_v50, %v2439_v48  ;;  %vm3094_vm8 = vcmask 1040384   ;;  %vm3111_vm9 = vcmask 56320  }
0x1772   :  { %2139 = vrot.lane.b32.xlu0 %v2138_v60, %s4093_s11  ;;  %v2907_v29 = vsel %vm2906_vm10, %v2905_v52, %v2901_v14  ;;  %vm3145_vm10 = vcmask 58368  }
0x17ab   :  { %v3050_v40 = vpop.permute.xlu1 %3049 }
0x17ac   :  { %v3054_v4 = vmul.f32 %v4910_v43, %v3050_v40 }
0x17ae   :  { %v3056_v54 = vmul.f32 %v3054_v4, %v1978_v9 }
0x17af   :  { %v3048_v45 = vpop.permute.xlu1 %3047 }
0x17b0   :  { %v3053_v30 = vmul.f32 %v4908_v34, %v3048_v45  ;;  %v3059_v2 = vrot.slane %v3056_v54, 7  ;;  %v4095_v34 = vmov 0  }
0x17b1   :  { %3785 = vset.pattern.permute.xlu1 %v4095_v34  ;;  %3786 = vset.pattern.permute.xlu0 %v4095_v34 }
0x17b2   :  { %v3055_v53 = vmul.f32 %v3053_v30, %v1978_v9  ;;  %v3354_v9 = vld [vmem:[#allocation2] ss:$0 sm:$0xff] }
0x17e0   :  { %v1988_v41 = vpop.permute.xlu0 %1987 }
0x17e1   :  { %v1991_v27 = vsel %vm1990_vm4, %v1988_v41, 0.0  ;;  %vm3103_vm4 = vcmask 23552  }
0x17e2   :  { %1992 = vadd.xlane.f32.xlu1 %v1991_v27 }
0x17e4   :  { %v2140_v1 = vpop.permute.xlu0 %2139 }
0x17e5   :  { %v2143_v28 = vsel %vm2142_vm5, %v2140_v1, 0.0  ;;  %vm3105_vm5 = vcmask 31744  }
0x17e6   :  { %2144 = vadd.xlane.f32.xlu0 %v2143_v28 }
0x17f3   :  { %2292 = vrot.lane.b32.xlu1 %v2291_v38, %s4093_s11 }
0x17f7   :  { %2600 = vrot.lane.b32.xlu1 %v2599_v19, %s4093_s11 }
0x17fb   :  { %2754 = vrot.lane.b32.xlu1 %v2753_v51, %s4093_s11 }
0x17fc   :  { %2446 = vrot.lane.b32.xlu0 %v2445_v49, %s4093_s11 }
0x17ff   :  { %3060 = vrot.lane.b32.xlu1 %v3055_v53, %s4093_s11 }
0x1800   :  { %2908 = vrot.lane.b32.xlu0 %v2907_v29, %s4093_s11 }
0x1804   :  { %3062 = vrot.lane.b32.xlu0 %v3059_v2, %s4093_s11 }
0x186f   :  { %v1993_v43 = vpop.xlane.xlu1 %1992 }
0x1873   :  { %v2145_v55 = vpop.xlane.xlu0 %2144  ;;  %v2293_v56 = vpop.permute.xlu1 %2292 }
0x1874   :  { %v3075_v57 = vrot.slane %v2145_v55, 1  ;;  %v2296_v58 = vsel %vm2295_vm11, %v2293_v56, 0.0 }
0x1875   :  { %2297 = vadd.xlane.f32.xlu1 %v2296_v58 }
0x1876   :  { %v3100_v13 = vsel %vm3099_vm12, %v1993_v43, %v3075_v57 }
0x1877   :  { %v2447_v59 = vpop.permute.xlu0 %2446  ;;  %v2601_v61 = vpop.permute.xlu1 %2600 }
0x1878   :  { %v2450_v23 = vsel %vm2449_vm13, %v2447_v59, 0.0  ;;  %v2604_v31 = vsel %vm2603_vm14, %v2601_v61, 0.0 }
0x1879   :  { %2451 = vadd.xlane.f32.xlu0 %v2450_v23 }
0x187b   :  { %v2909_v0 = vpop.permute.xlu0 %2908  ;;  %v2755_v5 = vpop.permute.xlu1 %2754 }
0x187c   :  { %v2758_v62 = vsel %vm2757_vm15, %v2755_v5, 0.0  ;;  %v2912_v3 = vsel %vm2911_vm0, %v2909_v0, 0.0 }
0x187d   :  { %2605 = vadd.xlane.f32.xlu0 %v2604_v31  ;;  %2759 = vadd.xlane.f32.xlu1 %v2758_v62 }
0x187f   :  { %v3061_v63 = vpop.permute.xlu1 %3060  ;;  %v3063_v8 = vpop.permute.xlu0 %3062 }
0x1880   :  { %v3067_v6 = vsel %vm3066_vm1, %v3061_v63, 0.0  ;;  %v3071_v7 = vsel %vm3070_vm2, %v3063_v8, 0.0 }
0x1881   :  { %2913 = vadd.xlane.f32.xlu0 %v2912_v3  ;;  %3068 = vadd.xlane.f32.xlu1 %v3067_v6 }
0x1885   :  { %3072 = vadd.xlane.f32.xlu0 %v3071_v7 }
0x1892   :  { %3135 = vperm.xlu1 %3785, %v3354_v9  }
0x1902   :  { %v2298_v10 = vpop.xlane.xlu1 %2297 }
0x1903   :  { %v3078_v16 = vrot.slane %v2298_v10, 2 }
0x1905   :  { %v3102_v22 = vsel %vm3101_vm3, %v3100_v13, %v3078_v16 }
0x1906   :  { %v2452_v11 = vpop.xlane.xlu0 %2451 }
0x1907   :  { %v3081_v17 = vrot.slane %v2452_v11, 3 }
0x1909   :  { %v3104_v24 = vsel %vm3103_vm4, %v3102_v22, %v3081_v17 }
0x190a   :  { %v2606_v12 = vpop.xlane.xlu0 %2605  ;;  %v2760_v15 = vpop.xlane.xlu1 %2759 }
0x190b   :  { %v3084_v20 = vrot.slane %v2606_v12, 4  ;;  %v3087_v25 = vrot.slane %v2760_v15, 5 }
0x190d   :  { %v3106_v41 = vsel %vm3105_vm5, %v3104_v24, %v3084_v20 }
0x190e   :  { %v2914_v21 = vpop.xlane.xlu0 %2913  ;;  %v3069_v60 = vpop.xlane.xlu1 %3068  ;;  %v3108_v35 = vsel %vm3107_vm6, %v3106_v41, %v3087_v25 }
0x190f   :  { %v3090_v27 = vrot.slane %v2914_v21, 6  ;;  %v3095_v28 = vrot.slane %v3069_v60, 7 }
0x1911   :  { %v3110_v36 = vsel %vm3109_vm7, %v3108_v35, %v3090_v27 }
0x1912   :  { %v3073_v1 = vpop.xlane.xlu0 %3072  ;;  %v3136_v38 = vpop.permute.xlu1 %3135 }
0x1913   :  { %v3096_v33 = vrot.slane %v3073_v1, 7 }
0x1915   :  { %v3097_v40 = vsel %vm3094_vm8, %v3095_v28, %v3096_v33 }
0x1916   :  { %v3112_v37 = vsel %vm3111_vm9, %v3110_v36, %v3097_v40 }
0x1917   :  { %v3127_v39 = vadd.f32 %v4938_v26, %v3112_v37 }
0x1919   :  { %v3138_v42 = vadd.f32 %v3136_v38, %v3127_v39 }
0x191b   :  { %v3355_v32 = vmul.f32 -1.442695, %v3138_v42 }
0x191d   :  { %4061 = vpow2.f32 %v3355_v32 }
0x1927   :  { %v4062_v44 = vpop.eup %4061 }
0x1928   :  { %v3142_v45 = vadd.f32 1.0, %v4062_v44 }
0x192a   :  { %4063 = vrcp.f32 %v3142_v45 }
0x1934   :  { %v4064_v19 = vpop.eup %4063 }
0x1935   :  { %3146 = vst.msk [vmem:[#allocation3] sm:$0x3] %vm3145_vm10, %v4064_v19 }
0x1936   :  { %4076 = shalt.err (!%p4073_p4)
}
0x1937   :  { %s4077_s8 = scalar_lea.hbm %s4989_s16, 32 }
0x1938   :  { %p4078_p5 = scmp.ne.s32.totalorder %s4989_s16, %s4077_s8  ;;  %p4081_p6 = scmp.lt.u32.totalorder %s4077_s8, %s4989_s16 }
0x193a   :  { %p4083_p7 = pnand %p4081_p6, %p4078_p5 }
0x193c   :  { %4086 = shalt.err (!%p4083_p7)
}
0x193d   :  { %3156 = dma.vmem_to_hbm [thread:$0]  %s3154_s14, 32, %s4989_s16, [#allocation4]  }
0x193e   :  { %4087 = dma.done.wait [#allocation4], 32  }
0x193f   :  { %4088 = vsyncadd [#allocation4], 4294967264 }
0x1940   :  { %3160 = vsyncpa [#allocation4], 1 }

</bundles_post_ra>
